<compile_context>
chip_gen: v6e
topology: v6e:2x2x1
jax: 0.10.0
libtpu: 0.0.40
codegen_flags: <defaults>
</compile_context>

<pallas_src>
import functools

import jax
import jax.numpy as jnp
import numpy as np
from jax.experimental import pallas as pl
from jax.experimental.pallas import tpu as pltpu


IN_FEATURES = 784
HIDDEN_DIMS = (256, 128, 64, 64)
BN_EPS = 1e-5
LANE = 128      # hidden / output dims are padded up to this (lane-dense)
SUBLANE = 8     # f32 sublane count: batch is padded up to a multiple of this
OUT_PAD = LANE  # lane-dense logits slab width (real logits in [:, :out_features])


# ----------------------------------------------------------------------------
# Fused MLP kernel: 4 x (Linear + BatchNorm1d(batch stats) + ReLU) + classifier
# ----------------------------------------------------------------------------
def _fused_mlp_kernel(n_real, x_ref, *refs):
    """refs layout: 4 * (w, b, gamma, beta), then (cls_w, cls_b), then o_ref.

      x_ref : (N_pad, 784)   padded rows are zero and masked out of BN stats
      w_i   : (Fin_pad, Fout_pad)     b_i/gamma_i/beta_i : (1, Fout_pad)
      cls_w : (128, OUT_PAD)          cls_b : (1, OUT_PAD)
      o_ref : (N_pad, OUT_PAD)        lane-dense logits slab
    """
    o_ref = refs[-1]
    wc_ref, bc_ref = refs[-3], refs[-2]
    layer_refs = refs[:-3]

    h = x_ref[...]
    n_pad = h.shape[0]
    row_ids = jax.lax.broadcasted_iota(jnp.int32, (n_pad, 1), 0)
    mask = (row_ids < n_real).astype(jnp.float32)          # (N_pad, 1)
    inv_n = jnp.float32(1.0 / n_real)

    for li in range(4):
        w_ref, b_ref, g_ref, be_ref = layer_refs[4 * li:4 * li + 4]

        # Linear (MXU, f32 accumulate).
        z = jnp.dot(h, w_ref[...], preferred_element_type=jnp.float32) + b_ref[...]

        # BatchNorm1d(track_running_stats=False): batch stats over *real* rows
        # only; biased, cancellation-safe two-pass variance.
        mean = jnp.sum(z * mask, axis=0, keepdims=True) * inv_n
        diff = z - mean
        var = jnp.sum(diff * diff * mask, axis=0, keepdims=True) * inv_n

        # BN folded into one affine on (1,F) vectors; rsqrt goes to the EUP.
        s = g_ref[...] * jax.lax.rsqrt(var + BN_EPS)
        h = jnp.maximum(diff * s + be_ref[...], 0.0)        # ReLU

    # Classifier epilogue: one unmasked, lane-dense store.
    o_ref[...] = (jnp.dot(h, wc_ref[...], preferred_element_type=jnp.float32)
                  + bc_ref[...])


# ----------------------------------------------------------------------------
# One-time parameter preparation (hoisted out of the per-call forward)
# ----------------------------------------------------------------------------
def prepare_params(params, out_features):
    """f32 cast, (1,F) reshape, zero-pad every 64-wide dim to 128 lanes and the
    classifier output to OUT_PAD lanes.  Padded gamma/beta/bias columns are
    zero so padded columns stay exactly 0 through BN/ReLU."""
    dims = (IN_FEATURES,) + HIDDEN_DIMS                    # 784,256,128,64,64
    pdims = tuple(d if d >= LANE else LANE for d in dims)  # 784,256,128,128,128

    prepared = []
    for li in range(4):
        fin, fout = dims[li], dims[li + 1]
        pin, pout = pdims[li], pdims[li + 1]
        w = jnp.asarray(params[f"w{li}"], jnp.float32)
        prepared.append(jnp.pad(w, ((0, pin - fin), (0, pout - fout))))
        for name in ("b", "g", "beta"):
            v = jnp.asarray(params[f"{name}{li}"], jnp.float32).reshape(1, -1)
            prepared.append(jnp.pad(v, ((0, 0), (0, pout - fout))))

    wc = jnp.asarray(params["cls_w"], jnp.float32)
    bc = jnp.asarray(params["cls_b"], jnp.float32).reshape(1, -1)
    prepared.append(jnp.pad(wc, ((0, pdims[-1] - dims[-1]),
                                 (0, OUT_PAD - out_features))))
    prepared.append(jnp.pad(bc, ((0, 0), (0, OUT_PAD - out_features))))
    return tuple(prepared)


# ----------------------------------------------------------------------------
# Forward wrapper
# ----------------------------------------------------------------------------
def linear_model_forward(x, prepared, out_features):
    """x: any shape with N*784 elements (e.g. (N,1,28,28)); returns (N, out_features)."""
    flat = x.reshape(-1, IN_FEATURES).astype(jnp.float32)
    n = flat.shape[0]
    n_pad = ((n + SUBLANE - 1) // SUBLANE) * SUBLANE
    x2 = jnp.pad(flat, ((0, n_pad - n), (0, 0)))

    vmem = pl.BlockSpec(memory_space=pltpu.MemorySpace.VMEM)
    out = pl.pallas_call(
        functools.partial(_fused_mlp_kernel, n),
        out_shape=jax.ShapeDtypeStruct((n_pad, OUT_PAD), jnp.float32),
        in_specs=[vmem] * (1 + len(prepared)),
        out_specs=vmem,
    )(x2, *prepared)
    return out[:n, :out_features]


# ----------------------------------------------------------------------------
# Pure-JAX reference (PyTorch forward semantics, f32 precision)
# ----------------------------------------------------------------------------
def reference_forward(x, params, out_features):
    hi = jax.lax.Precision.HIGHEST
    h = x.reshape(-1, IN_FEATURES).astype(jnp.float32)
    for li in range(4):
        z = jnp.dot(h, params[f"w{li}"], precision=hi) + params[f"b{li}"]
        mean = jnp.mean(z, axis=0, keepdims=True)
        var = jnp.mean((z - mean) ** 2, axis=0, keepdims=True)  # biased
        h = jnp.maximum(
            (z - mean) * jax.lax.rsqrt(var + BN_EPS)
            * params[f"g{li}"] + params[f"beta{li}"], 0.0)
    return jnp.dot(h, params["cls_w"], precision=hi) + params["cls_b"]


if __name__ == "__main__":
    N, out_features = 2, 5
    dims = (IN_FEATURES,) + HIDDEN_DIMS  # 784 -> 256 -> 128 -> 64 -> 64

    key = jax.random.PRNGKey(0)
    params = {}
    for li in range(4):
        fan_in, fan_out = dims[li], dims[li + 1]
        key, kw, kb, kg, kbe = jax.random.split(key, 5)
        bound = 1.0 / np.sqrt(fan_in)
        params[f"w{li}"] = jax.random.uniform(
            kw, (fan_in, fan_out), jnp.float32, -bound, bound)
        params[f"b{li}"] = jax.random.uniform(
            kb, (fan_out,), jnp.float32, -bound, bound)
        params[f"g{li}"] = 1.0 + 0.1 * jax.random.normal(kg, (fan_out,), jnp.float32)
        params[f"beta{li}"] = 0.1 * jax.random.normal(kbe, (fan_out,), jnp.float32)

    key, kw, kb, kx = jax.random.split(key, 4)
    bound = 1.0 / np.sqrt(dims[-1])
    params["cls_w"] = jax.random.uniform(
        kw, (dims[-1], out_features), jnp.float32, -bound, bound)
    params["cls_b"] = jax.random.uniform(
        kb, (out_features,), jnp.float32, -bound, bound)

    # MNIST-like input; the forward flattens it to (-1, 784) exactly like
    # inputs.view(-1, 784) in the PyTorch module.
    x = jax.random.normal(kx, (N, 1, 28, 28), jnp.float32)

    # One-time parameter prep (hoisted out of the per-call forward).
    prepared = prepare_params(params, out_features)

    fwd = jax.jit(functools.partial(linear_model_forward,
                                    out_features=out_features))
    logits = jax.block_until_ready(fwd(x, prepared))

    ref = reference_forward(x, params, out_features)
    np.testing.assert_allclose(np.asarray(logits), np.asarray(ref),
                               rtol=1e-3, atol=1e-3)
    print("KERNEL_OK")
</pallas_src>

<mosaic_0001>
module attributes {stable_mosaic.version = 11 : i64} {
  func.func @_fused_mlp_kernel(%arg0: memref<8x784xf32, #tpu.memory_space<vmem>>, %arg1: memref<784x256xf32, #tpu.memory_space<vmem>>, %arg2: memref<1x256xf32, #tpu.memory_space<vmem>>, %arg3: memref<1x256xf32, #tpu.memory_space<vmem>>, %arg4: memref<1x256xf32, #tpu.memory_space<vmem>>, %arg5: memref<256x128xf32, #tpu.memory_space<vmem>>, %arg6: memref<1x128xf32, #tpu.memory_space<vmem>>, %arg7: memref<1x128xf32, #tpu.memory_space<vmem>>, %arg8: memref<1x128xf32, #tpu.memory_space<vmem>>, %arg9: memref<128x128xf32, #tpu.memory_space<vmem>>, %arg10: memref<1x128xf32, #tpu.memory_space<vmem>>, %arg11: memref<1x128xf32, #tpu.memory_space<vmem>>, %arg12: memref<1x128xf32, #tpu.memory_space<vmem>>, %arg13: memref<128x128xf32, #tpu.memory_space<vmem>>, %arg14: memref<1x128xf32, #tpu.memory_space<vmem>>, %arg15: memref<1x128xf32, #tpu.memory_space<vmem>>, %arg16: memref<1x128xf32, #tpu.memory_space<vmem>>, %arg17: memref<128x128xf32, #tpu.memory_space<vmem>>, %arg18: memref<1x128xf32, #tpu.memory_space<vmem>>, %arg19: memref<8x128xf32, #tpu.memory_space<vmem>>) attributes {dimension_semantics = [], scalar_prefetch = 0 : i64, scratch_operands = 0 : i64, tpu.core_type = #tpu.core_type<tc>} {
    %c0 = arith.constant 0 : index
    %c0_0 = arith.constant 0 : index
    %0 = vector.load %arg0[%c0, %c0_0] : memref<8x784xf32, #tpu.memory_space<vmem>>, vector<8x784xf32>
    %1 = tpu.iota {dimensions = array<i32: 0>} : vector<8x1xi32>
    %c2_i32 = arith.constant 2 : i32
    %2 = vector.broadcast %c2_i32 : i32 to vector<8x1xi32>
    %3 = arith.cmpi slt, %1, %2 : vector<8x1xi32>
    %4 = arith.extui %3 : vector<8x1xi1> to vector<8x1xi32>
    %5 = arith.sitofp %4 : vector<8x1xi32> to vector<8x1xf32>
    %c0_1 = arith.constant 0 : index
    %c0_2 = arith.constant 0 : index
    %6 = vector.load %arg1[%c0_1, %c0_2] : memref<784x256xf32, #tpu.memory_space<vmem>>, vector<784x256xf32>
    %cst = arith.constant dense<0.000000e+00> : vector<8x256xf32>
    %7 = tpu.matmul %0, %6, %cst {dimension_numbers = #tpu.dot_dimension_numbers<[1], [0], [0], [1], [0, 0, 1, 1], [], []>} : vector<8x784xf32>, vector<784x256xf32>, vector<8x256xf32> -> vector<8x256xf32>
    %c0_3 = arith.constant 0 : index
    %c0_4 = arith.constant 0 : index
    %8 = vector.load %arg2[%c0_3, %c0_4] : memref<1x256xf32, #tpu.memory_space<vmem>>, vector<1x256xf32>
    %9 = vector.broadcast %8 : vector<1x256xf32> to vector<8x256xf32>
    %10 = arith.addf %7, %9 : vector<8x256xf32>
    %11 = vector.broadcast %5 : vector<8x1xf32> to vector<8x256xf32>
    %12 = arith.mulf %10, %11 : vector<8x256xf32>
    %cst_5 = arith.constant dense<0.000000e+00> : vector<256xf32>
    %13 = vector.multi_reduction <add>, %12, %cst_5 [0] : vector<8x256xf32> to vector<256xf32>
    %14 = vector.shape_cast %13 : vector<256xf32> to vector<1x256xf32>
    %cst_6 = arith.constant 5.000000e-01 : f32
    %15 = vector.broadcast %cst_6 : f32 to vector<1x256xf32>
    %16 = arith.mulf %14, %15 : vector<1x256xf32>
    %17 = vector.broadcast %16 : vector<1x256xf32> to vector<8x256xf32>
    %18 = arith.subf %10, %17 : vector<8x256xf32>
    %19 = arith.mulf %18, %18 : vector<8x256xf32>
    %20 = vector.broadcast %5 : vector<8x1xf32> to vector<8x256xf32>
    %21 = arith.mulf %19, %20 : vector<8x256xf32>
    %cst_7 = arith.constant dense<0.000000e+00> : vector<256xf32>
    %22 = vector.multi_reduction <add>, %21, %cst_7 [0] : vector<8x256xf32> to vector<256xf32>
    %23 = vector.shape_cast %22 : vector<256xf32> to vector<1x256xf32>
    %cst_8 = arith.constant 5.000000e-01 : f32
    %24 = vector.broadcast %cst_8 : f32 to vector<1x256xf32>
    %25 = arith.mulf %23, %24 : vector<1x256xf32>
    %c0_9 = arith.constant 0 : index
    %c0_10 = arith.constant 0 : index
    %26 = vector.load %arg3[%c0_9, %c0_10] : memref<1x256xf32, #tpu.memory_space<vmem>>, vector<1x256xf32>
    %cst_11 = arith.constant 9.99999974E-6 : f32
    %27 = vector.broadcast %cst_11 : f32 to vector<1x256xf32>
    %28 = arith.addf %25, %27 : vector<1x256xf32>
    %29 = math.rsqrt %28 : vector<1x256xf32>
    %30 = arith.mulf %26, %29 : vector<1x256xf32>
    %31 = vector.broadcast %30 : vector<1x256xf32> to vector<8x256xf32>
    %32 = arith.mulf %18, %31 : vector<8x256xf32>
    %c0_12 = arith.constant 0 : index
    %c0_13 = arith.constant 0 : index
    %33 = vector.load %arg4[%c0_12, %c0_13] : memref<1x256xf32, #tpu.memory_space<vmem>>, vector<1x256xf32>
    %34 = vector.broadcast %33 : vector<1x256xf32> to vector<8x256xf32>
    %35 = arith.addf %32, %34 : vector<8x256xf32>
    %cst_14 = arith.constant 0.000000e+00 : f32
    %36 = vector.broadcast %cst_14 : f32 to vector<8x256xf32>
    %37 = arith.maximumf %35, %36 : vector<8x256xf32>
    %c0_15 = arith.constant 0 : index
    %c0_16 = arith.constant 0 : index
    %38 = vector.load %arg5[%c0_15, %c0_16] : memref<256x128xf32, #tpu.memory_space<vmem>>, vector<256x128xf32>
    %cst_17 = arith.constant dense<0.000000e+00> : vector<8x128xf32>
    %39 = tpu.matmul %37, %38, %cst_17 {dimension_numbers = #tpu.dot_dimension_numbers<[1], [0], [0], [1], [0, 0, 1, 1], [], []>} : vector<8x256xf32>, vector<256x128xf32>, vector<8x128xf32> -> vector<8x128xf32>
    %c0_18 = arith.constant 0 : index
    %c0_19 = arith.constant 0 : index
    %40 = vector.load %arg6[%c0_18, %c0_19] : memref<1x128xf32, #tpu.memory_space<vmem>>, vector<1x128xf32>
    %41 = vector.broadcast %40 : vector<1x128xf32> to vector<8x128xf32>
    %42 = arith.addf %39, %41 : vector<8x128xf32>
    %43 = vector.broadcast %5 : vector<8x1xf32> to vector<8x128xf32>
    %44 = arith.mulf %42, %43 : vector<8x128xf32>
    %cst_20 = arith.constant dense<0.000000e+00> : vector<128xf32>
    %45 = vector.multi_reduction <add>, %44, %cst_20 [0] : vector<8x128xf32> to vector<128xf32>
    %46 = vector.shape_cast %45 : vector<128xf32> to vector<1x128xf32>
    %cst_21 = arith.constant 5.000000e-01 : f32
    %47 = vector.broadcast %cst_21 : f32 to vector<1x128xf32>
    %48 = arith.mulf %46, %47 : vector<1x128xf32>
    %49 = vector.broadcast %48 : vector<1x128xf32> to vector<8x128xf32>
    %50 = arith.subf %42, %49 : vector<8x128xf32>
    %51 = arith.mulf %50, %50 : vector<8x128xf32>
    %52 = vector.broadcast %5 : vector<8x1xf32> to vector<8x128xf32>
    %53 = arith.mulf %51, %52 : vector<8x128xf32>
    %cst_22 = arith.constant dense<0.000000e+00> : vector<128xf32>
    %54 = vector.multi_reduction <add>, %53, %cst_22 [0] : vector<8x128xf32> to vector<128xf32>
    %55 = vector.shape_cast %54 : vector<128xf32> to vector<1x128xf32>
    %cst_23 = arith.constant 5.000000e-01 : f32
    %56 = vector.broadcast %cst_23 : f32 to vector<1x128xf32>
    %57 = arith.mulf %55, %56 : vector<1x128xf32>
    %c0_24 = arith.constant 0 : index
    %c0_25 = arith.constant 0 : index
    %58 = vector.load %arg7[%c0_24, %c0_25] : memref<1x128xf32, #tpu.memory_space<vmem>>, vector<1x128xf32>
    %cst_26 = arith.constant 9.99999974E-6 : f32
    %59 = vector.broadcast %cst_26 : f32 to vector<1x128xf32>
    %60 = arith.addf %57, %59 : vector<1x128xf32>
    %61 = math.rsqrt %60 : vector<1x128xf32>
    %62 = arith.mulf %58, %61 : vector<1x128xf32>
    %63 = vector.broadcast %62 : vector<1x128xf32> to vector<8x128xf32>
    %64 = arith.mulf %50, %63 : vector<8x128xf32>
    %c0_27 = arith.constant 0 : index
    %c0_28 = arith.constant 0 : index
    %65 = vector.load %arg8[%c0_27, %c0_28] : memref<1x128xf32, #tpu.memory_space<vmem>>, vector<1x128xf32>
    %66 = vector.broadcast %65 : vector<1x128xf32> to vector<8x128xf32>
    %67 = arith.addf %64, %66 : vector<8x128xf32>
    %cst_29 = arith.constant 0.000000e+00 : f32
    %68 = vector.broadcast %cst_29 : f32 to vector<8x128xf32>
    %69 = arith.maximumf %67, %68 : vector<8x128xf32>
    %c0_30 = arith.constant 0 : index
    %c0_31 = arith.constant 0 : index
    %70 = vector.load %arg9[%c0_30, %c0_31] : memref<128x128xf32, #tpu.memory_space<vmem>>, vector<128x128xf32>
    %cst_32 = arith.constant dense<0.000000e+00> : vector<8x128xf32>
    %71 = tpu.matmul %69, %70, %cst_32 {dimension_numbers = #tpu.dot_dimension_numbers<[1], [0], [0], [1], [0, 0, 1, 1], [], []>} : vector<8x128xf32>, vector<128x128xf32>, vector<8x128xf32> -> vector<8x128xf32>
    %c0_33 = arith.constant 0 : index
    %c0_34 = arith.constant 0 : index
    %72 = vector.load %arg10[%c0_33, %c0_34] : memref<1x128xf32, #tpu.memory_space<vmem>>, vector<1x128xf32>
    %73 = vector.broadcast %72 : vector<1x128xf32> to vector<8x128xf32>
    %74 = arith.addf %71, %73 : vector<8x128xf32>
    %75 = vector.broadcast %5 : vector<8x1xf32> to vector<8x128xf32>
    %76 = arith.mulf %74, %75 : vector<8x128xf32>
    %cst_35 = arith.constant dense<0.000000e+00> : vector<128xf32>
    %77 = vector.multi_reduction <add>, %76, %cst_35 [0] : vector<8x128xf32> to vector<128xf32>
    %78 = vector.shape_cast %77 : vector<128xf32> to vector<1x128xf32>
    %cst_36 = arith.constant 5.000000e-01 : f32
    %79 = vector.broadcast %cst_36 : f32 to vector<1x128xf32>
    %80 = arith.mulf %78, %79 : vector<1x128xf32>
    %81 = vector.broadcast %80 : vector<1x128xf32> to vector<8x128xf32>
    %82 = arith.subf %74, %81 : vector<8x128xf32>
    %83 = arith.mulf %82, %82 : vector<8x128xf32>
    %84 = vector.broadcast %5 : vector<8x1xf32> to vector<8x128xf32>
    %85 = arith.mulf %83, %84 : vector<8x128xf32>
    %cst_37 = arith.constant dense<0.000000e+00> : vector<128xf32>
    %86 = vector.multi_reduction <add>, %85, %cst_37 [0] : vector<8x128xf32> to vector<128xf32>
    %87 = vector.shape_cast %86 : vector<128xf32> to vector<1x128xf32>
    %cst_38 = arith.constant 5.000000e-01 : f32
    %88 = vector.broadcast %cst_38 : f32 to vector<1x128xf32>
    %89 = arith.mulf %87, %88 : vector<1x128xf32>
    %c0_39 = arith.constant 0 : index
    %c0_40 = arith.constant 0 : index
    %90 = vector.load %arg11[%c0_39, %c0_40] : memref<1x128xf32, #tpu.memory_space<vmem>>, vector<1x128xf32>
    %cst_41 = arith.constant 9.99999974E-6 : f32
    %91 = vector.broadcast %cst_41 : f32 to vector<1x128xf32>
    %92 = arith.addf %89, %91 : vector<1x128xf32>
    %93 = math.rsqrt %92 : vector<1x128xf32>
    %94 = arith.mulf %90, %93 : vector<1x128xf32>
    %95 = vector.broadcast %94 : vector<1x128xf32> to vector<8x128xf32>
    %96 = arith.mulf %82, %95 : vector<8x128xf32>
    %c0_42 = arith.constant 0 : index
    %c0_43 = arith.constant 0 : index
    %97 = vector.load %arg12[%c0_42, %c0_43] : memref<1x128xf32, #tpu.memory_space<vmem>>, vector<1x128xf32>
    %98 = vector.broadcast %97 : vector<1x128xf32> to vector<8x128xf32>
    %99 = arith.addf %96, %98 : vector<8x128xf32>
    %cst_44 = arith.constant 0.000000e+00 : f32
    %100 = vector.broadcast %cst_44 : f32 to vector<8x128xf32>
    %101 = arith.maximumf %99, %100 : vector<8x128xf32>
    %c0_45 = arith.constant 0 : index
    %c0_46 = arith.constant 0 : index
    %102 = vector.load %arg13[%c0_45, %c0_46] : memref<128x128xf32, #tpu.memory_space<vmem>>, vector<128x128xf32>
    %cst_47 = arith.constant dense<0.000000e+00> : vector<8x128xf32>
    %103 = tpu.matmul %101, %102, %cst_47 {dimension_numbers = #tpu.dot_dimension_numbers<[1], [0], [0], [1], [0, 0, 1, 1], [], []>} : vector<8x128xf32>, vector<128x128xf32>, vector<8x128xf32> -> vector<8x128xf32>
    %c0_48 = arith.constant 0 : index
    %c0_49 = arith.constant 0 : index
    %104 = vector.load %arg14[%c0_48, %c0_49] : memref<1x128xf32, #tpu.memory_space<vmem>>, vector<1x128xf32>
    %105 = vector.broadcast %104 : vector<1x128xf32> to vector<8x128xf32>
    %106 = arith.addf %103, %105 : vector<8x128xf32>
    %107 = vector.broadcast %5 : vector<8x1xf32> to vector<8x128xf32>
    %108 = arith.mulf %106, %107 : vector<8x128xf32>
    %cst_50 = arith.constant dense<0.000000e+00> : vector<128xf32>
    %109 = vector.multi_reduction <add>, %108, %cst_50 [0] : vector<8x128xf32> to vector<128xf32>
    %110 = vector.shape_cast %109 : vector<128xf32> to vector<1x128xf32>
    %cst_51 = arith.constant 5.000000e-01 : f32
    %111 = vector.broadcast %cst_51 : f32 to vector<1x128xf32>
    %112 = arith.mulf %110, %111 : vector<1x128xf32>
    %113 = vector.broadcast %112 : vector<1x128xf32> to vector<8x128xf32>
    %114 = arith.subf %106, %113 : vector<8x128xf32>
    %115 = arith.mulf %114, %114 : vector<8x128xf32>
    %116 = vector.broadcast %5 : vector<8x1xf32> to vector<8x128xf32>
    %117 = arith.mulf %115, %116 : vector<8x128xf32>
    %cst_52 = arith.constant dense<0.000000e+00> : vector<128xf32>
    %118 = vector.multi_reduction <add>, %117, %cst_52 [0] : vector<8x128xf32> to vector<128xf32>
    %119 = vector.shape_cast %118 : vector<128xf32> to vector<1x128xf32>
    %cst_53 = arith.constant 5.000000e-01 : f32
    %120 = vector.broadcast %cst_53 : f32 to vector<1x128xf32>
    %121 = arith.mulf %119, %120 : vector<1x128xf32>
    %c0_54 = arith.constant 0 : index
    %c0_55 = arith.constant 0 : index
    %122 = vector.load %arg15[%c0_54, %c0_55] : memref<1x128xf32, #tpu.memory_space<vmem>>, vector<1x128xf32>
    %cst_56 = arith.constant 9.99999974E-6 : f32
    %123 = vector.broadcast %cst_56 : f32 to vector<1x128xf32>
    %124 = arith.addf %121, %123 : vector<1x128xf32>
    %125 = math.rsqrt %124 : vector<1x128xf32>
    %126 = arith.mulf %122, %125 : vector<1x128xf32>
    %127 = vector.broadcast %126 : vector<1x128xf32> to vector<8x128xf32>
    %128 = arith.mulf %114, %127 : vector<8x128xf32>
    %c0_57 = arith.constant 0 : index
    %c0_58 = arith.constant 0 : index
    %129 = vector.load %arg16[%c0_57, %c0_58] : memref<1x128xf32, #tpu.memory_space<vmem>>, vector<1x128xf32>
    %130 = vector.broadcast %129 : vector<1x128xf32> to vector<8x128xf32>
    %131 = arith.addf %128, %130 : vector<8x128xf32>
    %cst_59 = arith.constant 0.000000e+00 : f32
    %132 = vector.broadcast %cst_59 : f32 to vector<8x128xf32>
    %133 = arith.maximumf %131, %132 : vector<8x128xf32>
    %c0_60 = arith.constant 0 : index
    %c0_61 = arith.constant 0 : index
    %134 = vector.load %arg17[%c0_60, %c0_61] : memref<128x128xf32, #tpu.memory_space<vmem>>, vector<128x128xf32>
    %cst_62 = arith.constant dense<0.000000e+00> : vector<8x128xf32>
    %135 = tpu.matmul %133, %134, %cst_62 {dimension_numbers = #tpu.dot_dimension_numbers<[1], [0], [0], [1], [0, 0, 1, 1], [], []>} : vector<8x128xf32>, vector<128x128xf32>, vector<8x128xf32> -> vector<8x128xf32>
    %c0_63 = arith.constant 0 : index
    %c0_64 = arith.constant 0 : index
    %136 = vector.load %arg18[%c0_63, %c0_64] : memref<1x128xf32, #tpu.memory_space<vmem>>, vector<1x128xf32>
    %137 = vector.broadcast %136 : vector<1x128xf32> to vector<8x128xf32>
    %138 = arith.addf %135, %137 : vector<8x128xf32>
    %c0_65 = arith.constant 0 : index
    %c0_66 = arith.constant 0 : index
    %139 = vector.load %arg19[%c0_65, %c0_66] : memref<8x128xf32, #tpu.memory_space<vmem>>, vector<8x128xf32>
    tpu.vector_store %arg19[%c0_65, %c0_66], %138 {strides = array<i32>} : memref<8x128xf32, #tpu.memory_space<vmem>>, vector<8x128xf32>,
    return
  }
}

</mosaic_0001>

<bundles_post_ra>
// kernel: linear_model_forward.1
= control target key start
LH: loop header
LB: loop body
LE: loop exit
PB: predicated region body
PF: predicated region fallthrough
CT: control target
= control target key end

     0   :  { %s1909_s0 = inlined_call_operand.vmem [shape: f32[8,784], index: 0, kind: input, shape index: {}]   ;;  %s1910_s1 = inlined_call_operand.hbm [shape: f32[784,256], index: 1, kind: input, shape index: {}]   ;;  %s1911_s2 = inlined_call_operand.vmem [shape: f32[1,256], index: 2, kind: input, shape index: {}]   ;;  %s1912_s3 = inlined_call_operand.vmem [shape: f32[1,256], index: 3, kind: input, shape index: {}]   ;;  %s1913_s4 = inlined_call_operand.vmem [shape: f32[1,256], index: 4, kind: input, shape index: {}]   ;;  %s1914_s5 = inlined_call_operand.vmem [shape: f32[256,128], index: 5, kind: input, shape index: {}]   ;;  %s1915_s6 = inlined_call_operand.vmem [shape: f32[1,128], index: 6, kind: input, shape index: {}]   ;;  %s1916_s7 = inlined_call_operand.vmem [shape: f32[1,128], index: 7, kind: input, shape index: {}]   ;;  %s1917_s8 = inlined_call_operand.vmem [shape: f32[1,128], index: 8, kind: input, shape index: {}]   ;;  %s1918_s9 = inlined_call_operand.hbm [shape: f32[128,128], index: 9, kind: input, shape index: {}]   ;;  %s1919_s10 = inlined_call_operand.vmem [shape: f32[1,128], index: 10, kind: input, shape index: {}]   ;;  %s1920_s11 = inlined_call_operand.vmem [shape: f32[1,128], index: 11, kind: input, shape index: {}]   ;;  %s1921_s12 = inlined_call_operand.vmem [shape: f32[1,128], index: 12, kind: input, shape index: {}]   ;;  %s1922_s13 = inlined_call_operand.hbm [shape: f32[128,128], index: 13, kind: input, shape index: {}]   ;;  %s1923_s14 = inlined_call_operand.vmem [shape: f32[1,128], index: 14, kind: input, shape index: {}]   ;;  %s1924_s15 = inlined_call_operand.vmem [shape: f32[1,128], index: 15, kind: input, shape index: {}]   ;;  %s1925_s16 = inlined_call_operand.vmem [shape: f32[1,128], index: 16, kind: input, shape index: {}]   ;;  %s1926_s17 = inlined_call_operand.hbm [shape: f32[128,128], index: 17, kind: input, shape index: {}]   ;;  %s1927_s18 = inlined_call_operand.vmem [shape: f32[1,128], index: 18, kind: input, shape index: {}]   ;;  %s1928_s19 = inlined_call_operand.vmem [shape: f32[8,128], index: 19, kind: output, shape index: {}]  }
   0x1   :  { %1930 = sst [smem:[#allocation12_spill]] %s1909_s0 }
   0x2   :  { %1931 = sst [smem:[#allocation13_spill]] %s1910_s1 }
   0x3   :  { %1932 = sst [smem:[#allocation14_spill]] %s1911_s2 }
   0x4   :  { %1933 = sst [smem:[#allocation15_spill]] %s1912_s3 }
   0x5   :  { %24 = vsyncpa [#allocation3], 0 }
   0x6   :  { %25 = vsyncpa [#allocation5], 0 }
   0x7   :  { %26 = vsyncpa [#allocation8], 0  ;;  %s1531_s0 = smov [#allocation4]  }
   0x8   :  { %s60_s30 = sshll.u32 %s1531_s0, 4  ;;  %s61_s30 = int_to_ptr.vmem [resolvable:$true] %s60_s30 }
   0x9   :  { %s1453_s20 = scalar_lea.vmem %s61_s30, 2048  ;;  %p1458_p1 = scmp.lt.s32.totalorder %s61_s30, %s61_s30 }
   0xa   :  { %p1454_p0 = scmp.ne.s32.totalorder %s61_s30, %s1453_s20  ;;  %p1459_p2 = scmp.lt.s32.totalorder %s1453_s20, %s1453_s20 }
   0xc   :  { %p1460_p3 = por %p1459_p2, %p1458_p1 }
   0xe   :  { %p1461_p4 = pnand %p1460_p3, %p1454_p0 }
  0x10   :  { %1464 = shalt.err (!%p1461_p4)
}
  0x11   :  { %s1532_s21 = smov 128   ;;  %s1533_s1 = smov 8  }
  0x12   :  { %66 = dma.hbm_to_vmem [thread:$0]  %s1918_s9, 2048, %s61_s30, [#allocation5], %s1532_s21, %s1532_s21, %s1533_s1  }
  0x13   :  { %s1534_s23 = smov [#allocation2]  }
  0x14   :  { %s34_s24 = sshll.u32 %s1534_s23, 4  ;;  %s35_s24 = int_to_ptr.vmem [resolvable:$true] %s34_s24 }
  0x15   :  { %s1473_s25 = scalar_lea.vmem %s35_s24, 25088  ;;  %p1478_p6 = scmp.lt.s32.totalorder %s35_s24, %s35_s24 }
  0x16   :  { %p1474_p5 = scmp.ne.s32.totalorder %s35_s24, %s1473_s25  ;;  %p1479_p7 = scmp.lt.s32.totalorder %s1473_s25, %s1473_s25 }
  0x18   :  { %p1480_p8 = por %p1479_p7, %p1478_p6 }
  0x1a   :  { %p1481_p9 = pnand %p1480_p8, %p1474_p5 }
  0x1c   :  { %1484 = shalt.err (!%p1481_p9)
}
  0x1d   :  { %s1535_s3 = smov 256   ;;  %s1536_s26 = smov 16  }
  0x1e   :  { %s1934_s29 = sld [smem:[#allocation13_spill]]  ;;  %s1537_s0 = smov [#allocation6]  }
  0x1f   :  { %s78_s20 = sshll.u32 %s1537_s0, 4  ;;  %s1538_s22 = smov [#allocation7]   ;;  %s79_s20 = int_to_ptr.vmem [resolvable:$true] %s78_s20 }
  0x20   :  { %s96_s9 = sshll.u32 %s1538_s22, 4  ;;  %s1493_s30 = scalar_lea.vmem %s79_s20, 2048  ;;  %s97_s9 = int_to_ptr.vmem [resolvable:$true] %s96_s9 }
  0x21   :  { %p1494_p10 = scmp.ne.s32.totalorder %s79_s20, %s1493_s30  ;;  %p1498_p11 = scmp.lt.s32.totalorder %s79_s20, %s79_s20 }
  0x22   :  { %p1499_p12 = scmp.lt.s32.totalorder %s1493_s30, %s1493_s30 }
  0x24   :  { %40 = dma.hbm_to_vmem [thread:$0]  %s1934_s29, 25088, %s35_s24, [#allocation3], %s1535_s3, %s1535_s3, %s1536_s26  }
  0x25   :  { %p1500_p13 = por %p1499_p12, %p1498_p11 }
  0x27   :  { %p1501_p0 = pnand %p1500_p13, %p1494_p10 }
  0x29   :  { %1504 = shalt.err (!%p1501_p0)
}
  0x2a   :  { %84 = dma.hbm_to_vmem [thread:$0]  %s1922_s13, 2048, %s79_s20, [#allocation5], %s1532_s21, %s1532_s21, %s1533_s1  }
  0x2b   :  { %s1513_s24 = scalar_lea.vmem %s97_s9, 2048  ;;  %p1518_p2 = scmp.lt.s32.totalorder %s97_s9, %s97_s9 }
  0x2c   :  { %p1514_p1 = scmp.ne.s32.totalorder %s97_s9, %s1513_s24  ;;  %p1519_p3 = scmp.lt.s32.totalorder %s1513_s24, %s1513_s24 }
  0x2e   :  { %p1520_p4 = por %p1519_p3, %p1518_p2 }
  0x30   :  { %p1521_p5 = pnand %p1520_p4, %p1514_p1 }
  0x32   :  { %1524 = shalt.err (!%p1521_p5)
}
  0x33   :  { %102 = dma.hbm_to_vmem [thread:$0]  %s1926_s17, 2048, %s97_s9, [#allocation8], %s1532_s21, %s1532_s21, %s1533_s1  }
  0x34   :  { %1525 = dma.done.wait [#allocation3], 25088  }
  0x35   :  { %1526 = vsyncadd [#allocation3], 4294942208 }
  0x36   :  { %1527 = dma.done.wait [#allocation5], 4096  }
  0x37   :  { %1528 = vsyncadd [#allocation5], 4294963200 }
  0x38   :  { %1529 = dma.done.wait [#allocation8], 2048  }
  0x39   :  { %1530 = vsyncadd [#allocation8], 4294965248  ;;  %v160_v0 = vld [vmem:[#allocation2 + $0xf8] sm:$0xff]  ;;  %v159_v1 = vld [vmem:[#allocation2 + $0xf0] sm:$0xff]  ;;  %s1935_s21 = sld [smem:[#allocation12_spill]]  ;;  %vm337_vm0 = vcmask 130048  }
  0x3a   :  { %v158_v2 = vld [vmem:[#allocation2 + $0xe8] sm:$0xff]  ;;  %341 = vmatprep.subr.mxu0 %v160_v0  ;;  %v224_v3 = vld [vmem:[#allocation2 + $0x2f8] sm:$0xff]  ;;  %v157_v4 = vld [vmem:[#allocation2 + $0xe0] sm:$0xff]  ;;  %s1936_s20 = sld [smem:[#allocation14_spill]]  ;;  %vm1541_vm2 = vmmov 0  }
  0x3b   :  { %v223_v5 = vld [vmem:[#allocation2 + $0x2f0] sm:$0xff]  ;;  %342 = vmatpush1.msra.mxu0 %v159_v1  ;;  %412 = vmatprep.subr.mxu1 %v224_v3  ;;  %v156_v6 = vld [vmem:[#allocation2 + $0xd8] sm:$0xff]  ;;  %v222_v7 = vld [vmem:[#allocation2 + $0x2e8] sm:$0xff]  ;;  %s1937_s9 = sld [smem:[#allocation15_spill]] }
  0x3c   :  { %343 = vmatprep.subr.mxu0 %v158_v2  ;;  %413 = vmatpush1.msra.mxu1 %v223_v5  ;;  %v155_v8 = vld [vmem:[#allocation2 + $0xd0] sm:$0xff]  ;;  %v221_v9 = vld [vmem:[#allocation2 + $0x2e0] sm:$0xff]  ;;  %v220_v10 = vld [vmem:[#allocation2 + $0x2d8] sm:$0xff] }
  0x3d   :  { %344 = vmatpush1.msra.mxu0 %v157_v4  ;;  %414 = vmatprep.subr.mxu1 %v222_v7  ;;  %v154_v11 = vld [vmem:[#allocation2 + $0xc8] sm:$0xff]  ;;  %v219_v12 = vld [vmem:[#allocation2 + $0x2d0] sm:$0xff]  ;;  %v153_v13 = vld [vmem:[#allocation2 + $0xc0] sm:$0xff] }
  0x3e   :  { %345 = vmatprep.subr.mxu0 %v156_v6  ;;  %415 = vmatpush1.msra.mxu1 %v221_v9  ;;  %v218_v14 = vld [vmem:[#allocation2 + $0x2c8] sm:$0xff]  ;;  %v152_v15 = vld [vmem:[#allocation2 + $0xb8] sm:$0xff]  ;;  %v217_v16 = vld [vmem:[#allocation2 + $0x2c0] sm:$0xff] }
  0x3f   :  { %346 = vmatpush1.msra.mxu0 %v155_v8  ;;  %416 = vmatprep.subr.mxu1 %v220_v10  ;;  %v151_v17 = vld [vmem:[#allocation2 + $0xb0] sm:$0xff]  ;;  %v216_v18 = vld [vmem:[#allocation2 + $0x2b8] sm:$0xff]  ;;  %v150_v19 = vld [vmem:[#allocation2 + $0xa8] sm:$0xff] }
  0x40   :  { %347 = vmatprep.subr.mxu0 %v154_v11  ;;  %417 = vmatpush1.msra.mxu1 %v219_v12  ;;  %v215_v20 = vld [vmem:[#allocation2 + $0x2b0] sm:$0xff]  ;;  %v149_v21 = vld [vmem:[#allocation2 + $0xa0] sm:$0xff]  ;;  %v214_v22 = vld [vmem:[#allocation2 + $0x2a8] sm:$0xff] }
  0x41   :  { %348 = vmatpush1.msra.mxu0 %v153_v13  ;;  %418 = vmatprep.subr.mxu1 %v218_v14  ;;  %v148_v23 = vld [vmem:[#allocation2 + $0x98] sm:$0xff]  ;;  %v213_v24 = vld [vmem:[#allocation2 + $0x2a0] sm:$0xff]  ;;  %v147_v25 = vld [vmem:[#allocation2 + $0x90] sm:$0xff] }
  0x42   :  { %349 = vmatprep.subr.mxu0 %v152_v15  ;;  %419 = vmatpush1.msra.mxu1 %v217_v16  ;;  %v212_v26 = vld [vmem:[#allocation2 + $0x298] sm:$0xff]  ;;  %v146_v27 = vld [vmem:[#allocation2 + $0x88] sm:$0xff]  ;;  %v211_v28 = vld [vmem:[#allocation2 + $0x290] sm:$0xff] }
  0x43   :  { %350 = vmatpush1.msra.mxu0 %v151_v17  ;;  %420 = vmatprep.subr.mxu1 %v216_v18  ;;  %v145_v29 = vld [vmem:[#allocation2 + $0x80] sm:$0xff]  ;;  %v210_v30 = vld [vmem:[#allocation2 + $0x288] sm:$0xff]  ;;  %v144_v31 = vld [vmem:[#allocation2 + $0x78] sm:$0xff] }
  0x44   :  { %351 = vmatprep.subr.mxu0 %v150_v19  ;;  %421 = vmatpush1.msra.mxu1 %v215_v20  ;;  %v209_v32 = vld [vmem:[#allocation2 + $0x280] sm:$0xff]  ;;  %v143_v33 = vld [vmem:[#allocation2 + $0x70] sm:$0xff]  ;;  %v208_v34 = vld [vmem:[#allocation2 + $0x278] sm:$0xff] }
  0x45   :  { %352 = vmatpush1.msra.mxu0 %v149_v21  ;;  %422 = vmatprep.subr.mxu1 %v214_v22  ;;  %v142_v35 = vld [vmem:[#allocation2 + $0x68] sm:$0xff]  ;;  %v207_v36 = vld [vmem:[#allocation2 + $0x270] sm:$0xff]  ;;  %v141_v37 = vld [vmem:[#allocation2 + $0x60] sm:$0xff] }
  0x46   :  { %353 = vmatprep.subr.mxu0 %v148_v23  ;;  %423 = vmatpush1.msra.mxu1 %v213_v24  ;;  %v206_v38 = vld [vmem:[#allocation2 + $0x268] sm:$0xff]  ;;  %v140_v39 = vld [vmem:[#allocation2 + $0x58] sm:$0xff]  ;;  %v205_v40 = vld [vmem:[#allocation2 + $0x260] sm:$0xff] }
  0x47   :  { %354 = vmatpush1.msra.mxu0 %v147_v25  ;;  %424 = vmatprep.subr.mxu1 %v212_v26  ;;  %v139_v41 = vld [vmem:[#allocation2 + $0x50] sm:$0xff]  ;;  %v204_v42 = vld [vmem:[#allocation2 + $0x258] sm:$0xff]  ;;  %v138_v43 = vld [vmem:[#allocation2 + $0x48] sm:$0xff] }
  0x48   :  { %355 = vmatprep.subr.mxu0 %v146_v27  ;;  %425 = vmatpush1.msra.mxu1 %v211_v28  ;;  %v203_v44 = vld [vmem:[#allocation2 + $0x250] sm:$0xff]  ;;  %v137_v45 = vld [vmem:[#allocation2 + $0x40] sm:$0xff]  ;;  %v202_v46 = vld [vmem:[#allocation2 + $0x248] sm:$0xff] }
  0x49   :  { %356 = vmatpush1.msra.mxu0 %v145_v29  ;;  %426 = vmatprep.subr.mxu1 %v210_v30  ;;  %v136_v47 = vld [vmem:[#allocation2 + $0x38] sm:$0xff]  ;;  %v201_v48 = vld [vmem:[#allocation2 + $0x240] sm:$0xff]  ;;  %v135_v49 = vld [vmem:[#allocation2 + $0x30] sm:$0xff] }
  0x4a   :  { %357 = vmatprep.subr.mxu0 %v144_v31  ;;  %427 = vmatpush1.msra.mxu1 %v209_v32  ;;  %v200_v50 = vld [vmem:[#allocation2 + $0x238] sm:$0xff]  ;;  %v134_v51 = vld [vmem:[#allocation2 + $0x28] sm:$0xff]  ;;  %v199_v52 = vld [vmem:[#allocation2 + $0x230] sm:$0xff] }
  0x4b   :  { %358 = vmatpush1.msra.mxu0 %v143_v33  ;;  %428 = vmatprep.subr.mxu1 %v208_v34  ;;  %v133_v53 = vld [vmem:[#allocation2 + $0x20] sm:$0xff]  ;;  %v198_v54 = vld [vmem:[#allocation2 + $0x228] sm:$0xff]  ;;  %v132_v55 = vld [vmem:[#allocation2 + $0x18] sm:$0xff] }
  0x4c   :  { %359 = vmatprep.subr.mxu0 %v142_v35  ;;  %429 = vmatpush1.msra.mxu1 %v207_v36  ;;  %v197_v56 = vld [vmem:[#allocation2 + $0x220] sm:$0xff]  ;;  %v131_v57 = vld [vmem:[#allocation2 + $0x10] sm:$0xff]  ;;  %v196_v58 = vld [vmem:[#allocation2 + $0x218] sm:$0xff] }
  0x4d   :  { %360 = vmatpush1.msra.mxu0 %v141_v37  ;;  %430 = vmatprep.subr.mxu1 %v206_v38  ;;  %v130_v59 = vld [vmem:[#allocation2 + $0x8] sm:$0xff]  ;;  %v195_v60 = vld [vmem:[#allocation2 + $0x210] sm:$0xff]  ;;  %v129_v61 = vld [vmem:[#allocation2] sm:$0xff] }
  0x4e   :  { %361 = vmatprep.subr.mxu0 %v140_v39  ;;  %431 = vmatpush1.msra.mxu1 %v205_v40  ;;  %v194_v62 = vld [vmem:[#allocation2 + $0x208] sm:$0xff]  ;;  %v192_v63 = vld [vmem:[#allocation2 + $0x1f8] sm:$0xff]  ;;  %v193_v0 = vld [vmem:[#allocation2 + $0x200] sm:$0xff] }
  0x4f   :  { %362 = vmatpush1.msra.mxu0 %v139_v41  ;;  %432 = vmatprep.subr.mxu1 %v204_v42  ;;  %v191_v1 = vld [vmem:[#allocation2 + $0x1f0] sm:$0xff]  ;;  %v256_v2 = vld [vmem:[#allocation2 + $0x3f8] sm:$0xff]  ;;  %v190_v3 = vld [vmem:[#allocation2 + $0x1e8] sm:$0xff] }
  0x50   :  { %363 = vmatprep.subr.mxu0 %v138_v43  ;;  %433 = vmatpush1.msra.mxu1 %v203_v44  ;;  %v255_v4 = vld [vmem:[#allocation2 + $0x3f0] sm:$0xff]  ;;  %v189_v5 = vld [vmem:[#allocation2 + $0x1e0] sm:$0xff]  ;;  %v254_v6 = vld [vmem:[#allocation2 + $0x3e8] sm:$0xff] }
  0x51   :  { %364 = vmatpush1.msra.mxu0 %v137_v45  ;;  %434 = vmatprep.subr.mxu1 %v202_v46  ;;  %v188_v7 = vld [vmem:[#allocation2 + $0x1d8] sm:$0xff]  ;;  %v253_v8 = vld [vmem:[#allocation2 + $0x3e0] sm:$0xff]  ;;  %v187_v9 = vld [vmem:[#allocation2 + $0x1d0] sm:$0xff] }
  0x52   :  { %365 = vmatprep.subr.mxu0 %v136_v47  ;;  %435 = vmatpush1.msra.mxu1 %v201_v48  ;;  %v252_v10 = vld [vmem:[#allocation2 + $0x3d8] sm:$0xff]  ;;  %v186_v11 = vld [vmem:[#allocation2 + $0x1c8] sm:$0xff]  ;;  %v251_v12 = vld [vmem:[#allocation2 + $0x3d0] sm:$0xff] }
  0x53   :  { %366 = vmatpush1.msra.mxu0 %v135_v49  ;;  %436 = vmatprep.subr.mxu1 %v200_v50  ;;  %v185_v13 = vld [vmem:[#allocation2 + $0x1c0] sm:$0xff]  ;;  %v250_v14 = vld [vmem:[#allocation2 + $0x3c8] sm:$0xff]  ;;  %v184_v15 = vld [vmem:[#allocation2 + $0x1b8] sm:$0xff] }
  0x54   :  { %367 = vmatprep.subr.mxu0 %v134_v51  ;;  %437 = vmatpush1.msra.mxu1 %v199_v52  ;;  %v249_v16 = vld [vmem:[#allocation2 + $0x3c0] sm:$0xff]  ;;  %v183_v17 = vld [vmem:[#allocation2 + $0x1b0] sm:$0xff]  ;;  %v248_v18 = vld [vmem:[#allocation2 + $0x3b8] sm:$0xff] }
  0x55   :  { %368 = vmatpush1.msra.mxu0 %v133_v53  ;;  %438 = vmatprep.subr.mxu1 %v198_v54  ;;  %v182_v19 = vld [vmem:[#allocation2 + $0x1a8] sm:$0xff]  ;;  %v247_v20 = vld [vmem:[#allocation2 + $0x3b0] sm:$0xff]  ;;  %v181_v21 = vld [vmem:[#allocation2 + $0x1a0] sm:$0xff] }
  0x56   :  { %369 = vmatprep.subr.mxu0 %v132_v55  ;;  %439 = vmatpush1.msra.mxu1 %v197_v56  ;;  %v246_v22 = vld [vmem:[#allocation2 + $0x3a8] sm:$0xff]  ;;  %v180_v23 = vld [vmem:[#allocation2 + $0x198] sm:$0xff]  ;;  %v245_v24 = vld [vmem:[#allocation2 + $0x3a0] sm:$0xff] }
  0x57   :  { %370 = vmatpush1.msra.mxu0 %v131_v57  ;;  %440 = vmatprep.subr.mxu1 %v196_v58  ;;  %v179_v25 = vld [vmem:[#allocation2 + $0x190] sm:$0xff]  ;;  %v244_v26 = vld [vmem:[#allocation2 + $0x398] sm:$0xff]  ;;  %v178_v27 = vld [vmem:[#allocation2 + $0x188] sm:$0xff] }
  0x58   :  { %371 = vmatprep.subr.mxu0 %v130_v59  ;;  %441 = vmatpush1.msra.mxu1 %v195_v60  ;;  %v243_v28 = vld [vmem:[#allocation2 + $0x390] sm:$0xff]  ;;  %v177_v29 = vld [vmem:[#allocation2 + $0x180] sm:$0xff]  ;;  %v242_v30 = vld [vmem:[#allocation2 + $0x388] sm:$0xff] }
  0x59   :  { %372 = vmatpush1.msra.mxu0 %v129_v61  ;;  %442 = vmatprep.subr.mxu1 %v194_v62  ;;  %v176_v31 = vld [vmem:[#allocation2 + $0x178] sm:$0xff]  ;;  %v241_v32 = vld [vmem:[#allocation2 + $0x380] sm:$0xff]  ;;  %v175_v33 = vld [vmem:[#allocation2 + $0x170] sm:$0xff] }
  0x5a   :  { %373 = vmatprep.subr.mxu0 %v192_v63  ;;  %443 = vmatpush1.msra.mxu1 %v193_v0  ;;  %v240_v34 = vld [vmem:[#allocation2 + $0x378] sm:$0xff]  ;;  %v174_v35 = vld [vmem:[#allocation2 + $0x168] sm:$0xff]  ;;  %v239_v36 = vld [vmem:[#allocation2 + $0x370] sm:$0xff] }
  0x5b   :  { %374 = vmatpush2.msra.mxu0 %v191_v1  ;;  %444 = vmatprep.subr.mxu1 %v256_v2  ;;  %v173_v37 = vld [vmem:[#allocation2 + $0x160] sm:$0xff]  ;;  %v238_v38 = vld [vmem:[#allocation2 + $0x368] sm:$0xff]  ;;  %v172_v39 = vld [vmem:[#allocation2 + $0x158] sm:$0xff] }
  0x5c   :  { %375 = vmatprep.subr.mxu0 %v190_v3  ;;  %445 = vmatpush2.msra.mxu1 %v255_v4  ;;  %v237_v40 = vld [vmem:[#allocation2 + $0x360] sm:$0xff]  ;;  %v171_v41 = vld [vmem:[#allocation2 + $0x150] sm:$0xff]  ;;  %v236_v42 = vld [vmem:[#allocation2 + $0x358] sm:$0xff] }
  0x5d   :  { %376 = vmatpush2.msra.mxu0 %v189_v5  ;;  %446 = vmatprep.subr.mxu1 %v254_v6  ;;  %v170_v43 = vld [vmem:[#allocation2 + $0x148] sm:$0xff]  ;;  %v235_v44 = vld [vmem:[#allocation2 + $0x350] sm:$0xff]  ;;  %v169_v45 = vld [vmem:[#allocation2 + $0x140] sm:$0xff] }
  0x5e   :  { %377 = vmatprep.subr.mxu0 %v188_v7  ;;  %447 = vmatpush2.msra.mxu1 %v253_v8  ;;  %v234_v46 = vld [vmem:[#allocation2 + $0x348] sm:$0xff]  ;;  %v168_v47 = vld [vmem:[#allocation2 + $0x138] sm:$0xff]  ;;  %v233_v48 = vld [vmem:[#allocation2 + $0x340] sm:$0xff] }
  0x5f   :  { %378 = vmatpush2.msra.mxu0 %v187_v9  ;;  %448 = vmatprep.subr.mxu1 %v252_v10  ;;  %v167_v49 = vld [vmem:[#allocation2 + $0x130] sm:$0xff]  ;;  %v232_v50 = vld [vmem:[#allocation2 + $0x338] sm:$0xff]  ;;  %v166_v51 = vld [vmem:[#allocation2 + $0x128] sm:$0xff] }
  0x60   :  { %379 = vmatprep.subr.mxu0 %v186_v11  ;;  %449 = vmatpush2.msra.mxu1 %v251_v12  ;;  %v231_v52 = vld [vmem:[#allocation2 + $0x330] sm:$0xff]  ;;  %v165_v53 = vld [vmem:[#allocation2 + $0x120] sm:$0xff]  ;;  %v230_v54 = vld [vmem:[#allocation2 + $0x328] sm:$0xff] }
  0x61   :  { %380 = vmatpush2.msra.mxu0 %v185_v13  ;;  %450 = vmatprep.subr.mxu1 %v250_v14  ;;  %v164_v55 = vld [vmem:[#allocation2 + $0x118] sm:$0xff]  ;;  %v229_v56 = vld [vmem:[#allocation2 + $0x320] sm:$0xff]  ;;  %v163_v57 = vld [vmem:[#allocation2 + $0x110] sm:$0xff] }
  0x62   :  { %381 = vmatprep.subr.mxu0 %v184_v15  ;;  %451 = vmatpush2.msra.mxu1 %v249_v16  ;;  %v228_v58 = vld [vmem:[#allocation2 + $0x318] sm:$0xff]  ;;  %v162_v59 = vld [vmem:[#allocation2 + $0x108] sm:$0xff]  ;;  %v161_v61 = vld [vmem:[#allocation2 + $0x100] sm:$0xff] }
  0x63   :  { %382 = vmatpush2.msra.mxu0 %v183_v17  ;;  %452 = vmatprep.subr.mxu1 %v248_v18  ;;  %v118_v60 = vld [vmem:[%s1935_s21 + $0x8] sm:$0xff]  ;;  %v227_v62 = vld [vmem:[#allocation2 + $0x310] sm:$0xff]  ;;  %v117_v63 = vld [vmem:[%s1935_s21] sm:$0xff] }
  0x64   :  { %383 = vmatprep.subr.mxu0 %v182_v19  ;;  %453 = vmatpush2.msra.mxu1 %v247_v20  ;;  %v226_v0 = vld [vmem:[#allocation2 + $0x308] sm:$0xff]  ;;  %v288_v1 = vld [vmem:[#allocation2 + $0x4f8] sm:$0xff]  ;;  %v225_v2 = vld [vmem:[#allocation2 + $0x300] sm:$0xff] }
  0x65   :  { %384 = vmatpush2.msra.mxu0 %v181_v21  ;;  %454 = vmatprep.subr.mxu1 %v246_v22  ;;  %v120_v3 = vld [vmem:[%s1935_s21 + $0x18] sm:$0xff]  ;;  %v287_v4 = vld [vmem:[#allocation2 + $0x4f0] sm:$0xff]  ;;  %v286_v6 = vld [vmem:[#allocation2 + $0x4e8] sm:$0xff]  ;;  %v1539_v22 = vmov 0.0  }
  0x66   :  { %385 = vmatprep.subr.mxu0 %v180_v23  ;;  %455 = vmatpush2.msra.mxu1 %v245_v24  ;;  %v119_v5 = vld [vmem:[%s1935_s21 + $0x10] sm:$0xff]  ;;  %v285_v7 = vld [vmem:[#allocation2 + $0x4e0] sm:$0xff]  ;;  %v324_v8 = vld [vmem:[#allocation2 + $0x618] sm:$0xff] }
  0x67   :  { %386 = vmatpush2.msra.mxu0 %v179_v25  ;;  %456 = vmatprep.subr.mxu1 %v244_v26  ;;  %v284_v9 = vld [vmem:[#allocation2 + $0x4d8] sm:$0xff]  ;;  %v323_v10 = vld [vmem:[#allocation2 + $0x610] sm:$0xff]  ;;  %v322_v12 = vld [vmem:[#allocation2 + $0x608] sm:$0xff] }
  0x68   :  { %387 = vmatprep.subr.mxu0 %v178_v27  ;;  %457 = vmatpush2.msra.mxu1 %v243_v28  ;;  %v283_v11 = vld [vmem:[#allocation2 + $0x4d0] sm:$0xff]  ;;  %v282_v13 = vld [vmem:[#allocation2 + $0x4c8] sm:$0xff]  ;;  %v281_v15 = vld [vmem:[#allocation2 + $0x4c0] sm:$0xff] }
  0x69   :  { %388 = vmatpush2.msra.mxu0 %v177_v29  ;;  %458 = vmatprep.subr.mxu1 %v242_v30  ;;  %v122_v14 = vld [vmem:[%s1935_s21 + $0x28] sm:$0xff]  ;;  %v321_v16 = vld [vmem:[#allocation2 + $0x600] sm:$0xff]  ;;  %v280_v17 = vld [vmem:[#allocation2 + $0x4b8] sm:$0xff] }
  0x6a   :  { %389 = vmatprep.subr.mxu0 %v176_v31  ;;  %459 = vmatpush2.msra.mxu1 %v241_v32  ;;  %v279_v18 = vld [vmem:[#allocation2 + $0x4b0] sm:$0xff]  ;;  %v278_v20 = vld [vmem:[#allocation2 + $0x4a8] sm:$0xff]  ;;  %v277_v21 = vld [vmem:[#allocation2 + $0x4a0] sm:$0xff] }
  0x6b   :  { %390 = vmatpush2.msra.mxu0 %v175_v33  ;;  %460 = vmatprep.subr.mxu1 %v240_v34  ;;  %v123_v19 = vld [vmem:[%s1935_s21 + $0x30] sm:$0xff]  ;;  %v276_v23 = vld [vmem:[#allocation2 + $0x498] sm:$0xff]  ;;  %v274_v25 = vld [vmem:[#allocation2 + $0x488] sm:$0xff] }
  0x6c   :  { %391 = vmatprep.subr.mxu0 %v174_v35  ;;  %461 = vmatpush2.msra.mxu1 %v239_v36  ;;  %v275_v24 = vld [vmem:[#allocation2 + $0x490] sm:$0xff]  ;;  %v273_v26 = vld [vmem:[#allocation2 + $0x480] sm:$0xff]  ;;  %v272_v27 = vld [vmem:[#allocation2 + $0x478] sm:$0xff] }
  0x6d   :  { %392 = vmatpush2.msra.mxu0 %v173_v37  ;;  %462 = vmatprep.subr.mxu1 %v238_v38  ;;  %v271_v28 = vld [vmem:[#allocation2 + $0x470] sm:$0xff]  ;;  %v270_v29 = vld [vmem:[#allocation2 + $0x468] sm:$0xff]  ;;  %v269_v30 = vld [vmem:[#allocation2 + $0x460] sm:$0xff] }
  0x6e   :  { %393 = vmatprep.subr.mxu0 %v172_v39  ;;  %463 = vmatpush2.msra.mxu1 %v237_v40  ;;  %v268_v31 = vld [vmem:[#allocation2 + $0x458] sm:$0xff]  ;;  %v267_v32 = vld [vmem:[#allocation2 + $0x450] sm:$0xff]  ;;  %v266_v33 = vld [vmem:[#allocation2 + $0x448] sm:$0xff] }
  0x6f   :  { %394 = vmatpush2.msra.mxu0 %v171_v41  ;;  %464 = vmatprep.subr.mxu1 %v236_v42  ;;  %v265_v34 = vld [vmem:[#allocation2 + $0x440] sm:$0xff]  ;;  %v264_v35 = vld [vmem:[#allocation2 + $0x438] sm:$0xff]  ;;  %v263_v36 = vld [vmem:[#allocation2 + $0x430] sm:$0xff] }
  0x70   :  { %395 = vmatprep.subr.mxu0 %v170_v43  ;;  %465 = vmatpush2.msra.mxu1 %v235_v44  ;;  %v262_v37 = vld [vmem:[#allocation2 + $0x428] sm:$0xff]  ;;  %v261_v38 = vld [vmem:[#allocation2 + $0x420] sm:$0xff]  ;;  %v260_v39 = vld [vmem:[#allocation2 + $0x418] sm:$0xff] }
  0x71   :  { %396 = vmatpush2.msra.mxu0 %v169_v45  ;;  %466 = vmatprep.subr.mxu1 %v234_v46  ;;  %v259_v40 = vld [vmem:[#allocation2 + $0x410] sm:$0xff]  ;;  %v258_v41 = vld [vmem:[#allocation2 + $0x408] sm:$0xff]  ;;  %v257_v42 = vld [vmem:[#allocation2 + $0x400] sm:$0xff] }
  0x72   :  { %397 = vmatprep.subr.mxu0 %v168_v47  ;;  %467 = vmatpush2.msra.mxu1 %v233_v48  ;;  %v320_v43 = vld [vmem:[#allocation2 + $0x5f8] sm:$0xff]  ;;  %v319_v44 = vld [vmem:[#allocation2 + $0x5f0] sm:$0xff]  ;;  %v318_v45 = vld [vmem:[#allocation2 + $0x5e8] sm:$0xff] }
  0x73   :  { %398 = vmatpush2.msra.mxu0 %v167_v49  ;;  %468 = vmatprep.subr.mxu1 %v232_v50  ;;  %v317_v46 = vld [vmem:[#allocation2 + $0x5e0] sm:$0xff]  ;;  %v316_v47 = vld [vmem:[#allocation2 + $0x5d8] sm:$0xff]  ;;  %v315_v48 = vld [vmem:[#allocation2 + $0x5d0] sm:$0xff] }
  0x74   :  { %399 = vmatprep.subr.mxu0 %v166_v51  ;;  %469 = vmatpush2.msra.mxu1 %v231_v52  ;;  %v314_v49 = vld [vmem:[#allocation2 + $0x5c8] sm:$0xff]  ;;  %v313_v50 = vld [vmem:[#allocation2 + $0x5c0] sm:$0xff]  ;;  %v312_v51 = vld [vmem:[#allocation2 + $0x5b8] sm:$0xff] }
  0x75   :  { %400 = vmatpush2.msra.mxu0 %v165_v53  ;;  %470 = vmatprep.subr.mxu1 %v230_v54  ;;  %v311_v52 = vld [vmem:[#allocation2 + $0x5b0] sm:$0xff]  ;;  %v310_v53 = vld [vmem:[#allocation2 + $0x5a8] sm:$0xff]  ;;  %v309_v54 = vld [vmem:[#allocation2 + $0x5a0] sm:$0xff] }
  0x76   :  { %401 = vmatprep.subr.mxu0 %v164_v55  ;;  %471 = vmatpush2.msra.mxu1 %v229_v56  ;;  %v308_v55 = vld [vmem:[#allocation2 + $0x598] sm:$0xff]  ;;  %v307_v56 = vld [vmem:[#allocation2 + $0x590] sm:$0xff] }
  0x77   :  { %402 = vmatpush2.msra.mxu0 %v163_v57  ;;  %472 = vmatprep.subr.mxu1 %v228_v58  ;;  %v306_v57 = vld [vmem:[#allocation2 + $0x588] sm:$0xff]  ;;  %v305_v58 = vld [vmem:[#allocation2 + $0x580] sm:$0xff] }
  0x78   :  { %403 = vmatprep.subr.mxu0 %v162_v59  ;;  %405 = vmatprep.mubr.f32.mxu0 %v118_v60  ;;  %v304_v59 = vld [vmem:[#allocation2 + $0x578] sm:$0xff]  ;;  %v303_v60 = vld [vmem:[#allocation2 + $0x570] sm:$0xff] }
  0x79   :  { %404 = vmatpush2.msra.mxu0 %v161_v61  ;;  %473 = vmatpush2.msra.mxu1 %v227_v62  ;;  %v302_v61 = vld [vmem:[#allocation2 + $0x568] sm:$0xff]  ;;  %v301_v62 = vld [vmem:[#allocation2 + $0x560] sm:$0xff] }
  0x7a   :  { %406 = vmatmul.mubr.f32.vlgmr.msra.gmra.mxu0 %v117_v63  ;;  %474 = vmatprep.subr.mxu1 %v226_v0  ;;  %v300_v63 = vld [vmem:[#allocation2 + $0x558] sm:$0xff]  ;;  %v299_v0 = vld [vmem:[#allocation2 + $0x550] sm:$0xff] }
  0x7b   :  { %483 = vmatprep.subr.mxu0 %v288_v1  ;;  %475 = vmatpush2.msra.mxu1 %v225_v2  ;;  %v298_v1 = vld [vmem:[#allocation2 + $0x548] sm:$0xff]  ;;  %v297_v2 = vld [vmem:[#allocation2 + $0x540] sm:$0xff] }
  0x7c   :  { %476 = vmatprep.mubr.f32.mxu1 %v120_v3  ;;  %484 = vmatpush1.msra.mxu0 %v287_v4  ;;  %v296_v3 = vld [vmem:[#allocation2 + $0x538] sm:$0xff]  ;;  %v295_v4 = vld [vmem:[#allocation2 + $0x530] sm:$0xff] }
  0x7d   :  { %477 = vmatmul.mubr.f32.vlgmr.msra.gmra.mxu1 %v119_v5  ;;  %485 = vmatprep.subr.mxu0 %v286_v6  ;;  %v294_v5 = vld [vmem:[#allocation2 + $0x528] sm:$0xff]  ;;  %v293_v6 = vld [vmem:[#allocation2 + $0x520] sm:$0xff] }
  0x7e   :  { %486 = vmatpush1.msra.mxu0 %v285_v7  ;;  %582 = vmatprep.subr.mxu1 %v324_v8  ;;  %v292_v7 = vld [vmem:[#allocation2 + $0x518] sm:$0xff]  ;;  %v291_v8 = vld [vmem:[#allocation2 + $0x510] sm:$0xff] }
  0x7f   :  { %487 = vmatprep.subr.mxu0 %v284_v9  ;;  %583 = vmatpush1.msra.mxu1 %v323_v10  ;;  %v290_v9 = vld [vmem:[#allocation2 + $0x508] sm:$0xff]  ;;  %v289_v10 = vld [vmem:[#allocation2 + $0x500] sm:$0xff] }
  0x80   :  { %488 = vmatpush1.msra.mxu0 %v283_v11  ;;  %584 = vmatprep.subr.mxu1 %v322_v12  ;;  %v121_v11 = vld [vmem:[%s1935_s21 + $0x20] sm:$0xff]  ;;  %v745_v12 = vld [vmem:[%s1914_s5 + $0xf8] sm:$0xff] }
  0x81   :  { %489 = vmatprep.subr.mxu0 %v282_v13  ;;  %547 = vmatprep.mubr.f32.mxu0 %v122_v14  ;;  %v729_v13 = vld [vmem:[%s1914_s5 + $0x78] sm:$0xff]  ;;  %v744_v14 = vld [vmem:[%s1914_s5 + $0xf0] sm:$0xff] }
  0x82   :  { %490 = vmatpush1.msra.mxu0 %v281_v15  ;;  %585 = vmatpush1.msra.mxu1 %v321_v16  ;;  %v728_v15 = vld [vmem:[%s1914_s5 + $0x70] sm:$0xff]  ;;  %v743_v16 = vld [vmem:[%s1914_s5 + $0xe8] sm:$0xff] }
  0x83   :  { %491 = vmatprep.subr.mxu0 %v280_v17  ;;  %618 = vmatprep.mubr.f32.mxu1 %v1539_v22  ;;  %v727_v17 = vld [vmem:[%s1914_s5 + $0x68] sm:$0xff] }
  0x84   :  { %492 = vmatpush1.msra.mxu0 %v279_v18  ;;  %1225 = vmatmul.mubr.msk.f32.vlgmr.msra.gmra.mxu1 %vm337_vm0, %v123_v19  ;;  %v742_v18 = vld [vmem:[%s1914_s5 + $0xe0] sm:$0xff] }
  0x85   :  { %493 = vmatprep.subr.mxu0 %v278_v20  ;;  %1233 = vmatprep.subr.mxu1 %v745_v12  ;;  %v726_v19 = vld [vmem:[%s1914_s5 + $0x60] sm:$0xff]  ;;  %v741_v20 = vld [vmem:[%s1914_s5 + $0xd8] sm:$0xff] }
  0x86   :  { %494 = vmatpush1.msra.mxu0 %v277_v21  ;;  %1234 = vmatpush3.msra.mxu1 %v729_v13  ;;  %v725_v21 = vld [vmem:[%s1914_s5 + $0x58] sm:$0xff] }
  0x87   :  { %495 = vmatprep.subr.mxu0 %v276_v23  ;;  %1235 = vmatprep.subr.mxu1 %v744_v14  ;;  %v740_v23 = vld [vmem:[%s1914_s5 + $0xd0] sm:$0xff] }
  0x88   :  { %496 = vmatpush1.msra.mxu0 %v275_v24  ;;  %1236 = vmatpush3.msra.mxu1 %v728_v15  ;;  %v724_v24 = vld [vmem:[%s1914_s5 + $0x50] sm:$0xff] }
  0x89   :  { %497 = vmatprep.subr.mxu0 %v274_v25  ;;  %1237 = vmatprep.subr.mxu1 %v743_v16  ;;  %v739_v25 = vld [vmem:[%s1914_s5 + $0xc8] sm:$0xff] }
  0x8a   :  { %498 = vmatpush1.msra.mxu0 %v273_v26  ;;  %1238 = vmatpush3.msra.mxu1 %v727_v17  ;;  %v723_v26 = vld [vmem:[%s1914_s5 + $0x48] sm:$0xff] }
  0x8b   :  { %499 = vmatprep.subr.mxu0 %v272_v27  ;;  %1239 = vmatprep.subr.mxu1 %v742_v18  ;;  %v738_v27 = vld [vmem:[%s1914_s5 + $0xc0] sm:$0xff] }
  0x8c   :  { %500 = vmatpush1.msra.mxu0 %v271_v28  ;;  %1240 = vmatpush3.msra.mxu1 %v726_v19  ;;  %v722_v28 = vld [vmem:[%s1914_s5 + $0x40] sm:$0xff] }
  0x8d   :  { %501 = vmatprep.subr.mxu0 %v270_v29  ;;  %1241 = vmatprep.subr.mxu1 %v741_v20  ;;  %v737_v29 = vld [vmem:[%s1914_s5 + $0xb8] sm:$0xff] }
  0x8e   :  { %502 = vmatpush1.msra.mxu0 %v269_v30  ;;  %1242 = vmatpush3.msra.mxu1 %v725_v21  ;;  %v721_v30 = vld [vmem:[%s1914_s5 + $0x38] sm:$0xff] }
  0x8f   :  { %503 = vmatprep.subr.mxu0 %v268_v31  ;;  %1243 = vmatprep.subr.mxu1 %v740_v23  ;;  %v736_v31 = vld [vmem:[%s1914_s5 + $0xb0] sm:$0xff] }
  0x90   :  { %504 = vmatpush1.msra.mxu0 %v267_v32  ;;  %1244 = vmatpush3.msra.mxu1 %v724_v24  ;;  %v720_v32 = vld [vmem:[%s1914_s5 + $0x30] sm:$0xff] }
  0x91   :  { %505 = vmatprep.subr.mxu0 %v266_v33  ;;  %1245 = vmatprep.subr.mxu1 %v739_v25  ;;  %v735_v33 = vld [vmem:[%s1914_s5 + $0xa8] sm:$0xff] }
  0x92   :  { %506 = vmatpush1.msra.mxu0 %v265_v34  ;;  %1246 = vmatpush3.msra.mxu1 %v723_v26  ;;  %v719_v34 = vld [vmem:[%s1914_s5 + $0x28] sm:$0xff] }
  0x93   :  { %507 = vmatprep.subr.mxu0 %v264_v35  ;;  %1247 = vmatprep.subr.mxu1 %v738_v27  ;;  %v734_v35 = vld [vmem:[%s1914_s5 + $0xa0] sm:$0xff] }
  0x94   :  { %508 = vmatpush1.msra.mxu0 %v263_v36  ;;  %1248 = vmatpush3.msra.mxu1 %v722_v28  ;;  %v718_v36 = vld [vmem:[%s1914_s5 + $0x20] sm:$0xff] }
  0x95   :  { %509 = vmatprep.subr.mxu0 %v262_v37  ;;  %1249 = vmatprep.subr.mxu1 %v737_v29  ;;  %v733_v37 = vld [vmem:[%s1914_s5 + $0x98] sm:$0xff] }
  0x96   :  { %510 = vmatpush1.msra.mxu0 %v261_v38  ;;  %1250 = vmatpush3.msra.mxu1 %v721_v30  ;;  %v717_v38 = vld [vmem:[%s1914_s5 + $0x18] sm:$0xff] }
  0x97   :  { %511 = vmatprep.subr.mxu0 %v260_v39  ;;  %1251 = vmatprep.subr.mxu1 %v736_v31  ;;  %v732_v39 = vld [vmem:[%s1914_s5 + $0x90] sm:$0xff] }
  0x98   :  { %512 = vmatpush1.msra.mxu0 %v259_v40  ;;  %1252 = vmatpush3.msra.mxu1 %v720_v32  ;;  %v716_v40 = vld [vmem:[%s1914_s5 + $0x10] sm:$0xff] }
  0x99   :  { %513 = vmatprep.subr.mxu0 %v258_v41  ;;  %1253 = vmatprep.subr.mxu1 %v735_v33  ;;  %v731_v41 = vld [vmem:[%s1914_s5 + $0x88] sm:$0xff] }
  0x9a   :  { %514 = vmatpush1.msra.mxu0 %v257_v42  ;;  %1254 = vmatpush3.msra.mxu1 %v719_v34  ;;  %v715_v42 = vld [vmem:[%s1914_s5 + $0x8] sm:$0xff] }
  0x9b   :  { %515 = vmatprep.subr.mxu0 %v320_v43  ;;  %1255 = vmatprep.subr.mxu1 %v734_v35  ;;  %v730_v43 = vld [vmem:[%s1914_s5 + $0x80] sm:$0xff] }
  0x9c   :  { %516 = vmatpush2.msra.mxu0 %v319_v44  ;;  %1256 = vmatpush3.msra.mxu1 %v718_v36  ;;  %v714_v44 = vld [vmem:[%s1914_s5] sm:$0xff] }
  0x9d   :  { %517 = vmatprep.subr.mxu0 %v318_v45  ;;  %1257 = vmatprep.subr.mxu1 %v733_v37  ;;  %v124_v45 = vlaneseq }
  0x9e   :  { %518 = vmatpush2.msra.mxu0 %v317_v46  ;;  %1258 = vmatpush3.msra.mxu1 %v717_v38 }
  0x9f   :  { %519 = vmatprep.subr.mxu0 %v316_v47  ;;  %1259 = vmatprep.subr.mxu1 %v732_v39  ;;  %v1783_v46 = vshrl.u32 %v124_v45, 7 }
  0xa0   :  { %520 = vmatpush2.msra.mxu0 %v315_v48  ;;  %1260 = vmatpush3.msra.mxu1 %v716_v40  ;;  %v325_v48 = vld [vmem:[%s1936_s20] sm:$0x3] }
  0xa1   :  { %521 = vmatprep.subr.mxu0 %v314_v49  ;;  %1261 = vmatprep.subr.mxu1 %v731_v41  ;;  %v1786_v47 = vsub.s32 0, %v1783_v46  ;;  %v1792_v49 = vsub.s32 1, %v1783_v46  ;;  %vm126_vm1 = vcmp.lt.s32.totalorder %v1783_v46, 2 }
  0xa2   :  { %522 = vmatpush2.msra.mxu0 %v313_v50  ;;  %1262 = vmatpush3.msra.mxu1 %v715_v42 }
  0xa3   :  { %523 = vmatprep.subr.mxu0 %v312_v51  ;;  %1263 = vmatprep.subr.mxu1 %v730_v43  ;;  %v330_v51 = vrot.slane %v325_v48, %v1786_v47 }
  0xa4   :  { %524 = vmatpush2.msra.mxu0 %v311_v52  ;;  %1264 = vmatpush3.msra.mxu1 %v714_v44  ;;  %v334_v52 = vrot.slane %v325_v48, %v1792_v49  ;;  %v1540_v44 = vmov 1966171168  }
  0xa5   :  { %525 = vmatprep.subr.mxu0 %v310_v53  ;;  %1319 = vmatprep.subr.mxu1 %v1539_v22  ;;  %v670_v45 = vunpack.c.l.s4 %v1540_v44 }
  0xa6   :  { %526 = vmatpush2.msra.mxu0 %v309_v54 }
  0xa7   :  { %527 = vmatprep.subr.mxu0 %v308_v55  ;;  %v671_v48 = vunpack.c.0.s8 %v670_v45  ;;  %v841_v45 = vld [vmem:[%s1916_s7] sm:$0x1] }
  0xa8   :  { %528 = vmatpush2.msra.mxu0 %v307_v56 }
  0xa9   :  { %529 = vmatprep.subr.mxu0 %v306_v57 }
  0xaa   :  { %530 = vmatpush2.msra.mxu0 %v305_v58 }
  0xab   :  { %531 = vmatprep.subr.mxu0 %v304_v59 }
  0xac   :  { %532 = vmatpush2.msra.mxu0 %v303_v60 }
  0xad   :  { %533 = vmatprep.subr.mxu0 %v302_v61 }
  0xae   :  { %534 = vmatpush2.msra.mxu0 %v301_v62 }
  0xaf   :  { %535 = vmatprep.subr.mxu0 %v300_v63  ;;  %v1798_v63 = vsel %vm126_vm1, 1.0, %v1539_v22 }
  0xb0   :  { %536 = vmatpush2.msra.mxu0 %v299_v0 }
  0xb1   :  { %537 = vmatprep.subr.mxu0 %v298_v1 }
  0xb2   :  { %538 = vmatpush2.msra.mxu0 %v297_v2 }
  0xb3   :  { %539 = vmatprep.subr.mxu0 %v296_v3 }
  0xb4   :  { %540 = vmatpush2.msra.mxu0 %v295_v4 }
  0xb5   :  { %541 = vmatprep.subr.mxu0 %v294_v5 }
  0xb6   :  { %542 = vmatpush2.msra.mxu0 %v293_v6 }
  0xb7   :  { %543 = vmatprep.subr.mxu0 %v292_v7 }
  0xb8   :  { %544 = vmatpush2.msra.mxu0 %v291_v8 }
  0xb9   :  { %545 = vmatprep.subr.mxu0 %v290_v9 }
  0xba   :  { %546 = vmatpush2.msra.mxu0 %v289_v10 }
  0xbb   :  { %548 = vmatmul.mubr.f32.vlgmr.msra.gmra.mxu0 %v121_v11  ;;  %1354 = vmatprep.subr.mxu0 %v1539_v22 }
  0xbc   :  { %1386 = vmatprep.mubr.msk.f32.mxu0 %vm1541_vm2, %v1539_v22 }
 0x13a   :  { %v407_v50 = vpop.f32.mrf.mxu0 }
 0x13b   :  { %v408_v55 = vadd.f32 %v407_v50, %v330_v51  ;;  %v674_v51 = vsub.s32 %v671_v48, %v1783_v46 }
 0x13c   :  { %v409_v53 = vpop.f32.mrf.mxu0 }
 0x13d   :  { %v478_v54 = vpop.f32.mrf.mxu1  ;;  %v410_v56 = vadd.f32 %v409_v53, %v334_v52 }
 0x13e   :  { %v479_v58 = vadd.f32 %v478_v54, %v408_v55  ;;  %v661_v55 = vld [vmem:[%s1937_s9] sm:$0x3] }
 0x13f   :  { %v480_v57 = vpop.f32.mrf.mxu1 }
 0x140   :  { %v481_v61 = vadd.f32 %v480_v57, %v410_v56  ;;  %v698_v57 = vld [vmem:[%s1913_s4] sm:$0x3] }
 0x141   :  { %v707_v46 = vrot.slane %v698_v57, %v1792_v49 }
 0x144   :  { %v620_v60 = vpop.f32.mrf.mxu1 }
 0x146   :  { %v622_v3 = vpop.f32.mrf.mxu1 }
 0x17b   :  { %v549_v59 = vpop.f32.mrf.mxu0 }
 0x17c   :  { %v550_v62 = vadd.f32 %v549_v59, %v479_v58 }
 0x17d   :  { %v551_v0 = vpop.f32.mrf.mxu0 }
 0x17e   :  { %v621_v1 = vadd.f32 %v620_v60, %v550_v62  ;;  %v552_v2 = vadd.f32 %v551_v0, %v481_v61  ;;  %v703_v61 = vrot.slane %v698_v57, %v1786_v47  ;;  %v1006_v57 = vld [vmem:[#allocation6 + $0x70] sm:$0xff] }
 0x180   :  { %v625_v4 = vmul.f32 %v1798_v63, %v621_v1  ;;  %v623_v5 = vadd.f32 %v622_v3, %v552_v2 }
 0x182   :  { %v627_v6 = vrot.slane %v625_v4, 4  ;;  %v626_v7 = vmul.f32 %v1798_v63, %v623_v5 }
 0x184   :  { %v628_v8 = vadd.f32 %v627_v6, %v625_v4  ;;  %v633_v9 = vrot.slane %v626_v7, 4  ;;  %v875_v6 = vld [vmem:[#allocation4 + $0x70] sm:$0xff] }
 0x186   :  { %v629_v10 = vrot.slane %v628_v8, 2  ;;  %v634_v11 = vadd.f32 %v633_v9, %v626_v7  ;;  %v874_v7 = vld [vmem:[#allocation4 + $0x68] sm:$0xff]  ;;  %v871_v9 = vld [vmem:[#allocation4 + $0x50] sm:$0xff] }
 0x188   :  { %v630_v12 = vadd.f32 %v629_v10, %v628_v8  ;;  %v635_v13 = vrot.slane %v634_v11, 2  ;;  %v872_v8 = vld [vmem:[#allocation4 + $0x58] sm:$0xff]  ;;  %v870_v10 = vld [vmem:[#allocation4 + $0x48] sm:$0xff] }
 0x18a   :  { %v631_v14 = vrot.slane %v630_v12, 1  ;;  %v636_v15 = vadd.f32 %v635_v13, %v634_v11  ;;  %v869_v11 = vld [vmem:[#allocation4 + $0x40] sm:$0xff]  ;;  %v867_v13 = vld [vmem:[#allocation4 + $0x30] sm:$0xff] }
 0x18c   :  { %v632_v16 = vadd.f32 %v631_v14, %v630_v12  ;;  %v637_v17 = vrot.slane %v636_v15, 1  ;;  %v868_v12 = vld [vmem:[#allocation4 + $0x38] sm:$0xff]  ;;  %v866_v14 = vld [vmem:[#allocation4 + $0x28] sm:$0xff] }
 0x18e   :  { %v639_v18 = vmul.f32 0.5, %v632_v16  ;;  %v638_v19 = vadd.f32 %v637_v17, %v636_v15  ;;  %v865_v15 = vld [vmem:[#allocation4 + $0x20] sm:$0xff]  ;;  %v864_v16 = vld [vmem:[#allocation4 + $0x18] sm:$0xff]  ;;  %v863_v17 = vld [vmem:[#allocation4 + $0x10] sm:$0xff] }
 0x190   :  { %v641_v20 = vsub.f32 %v621_v1, %v639_v18  ;;  %v640_v21 = vmul.f32 0.5, %v638_v19  ;;  %v862_v18 = vld [vmem:[#allocation4 + $0x8] sm:$0xff]  ;;  %v861_v19 = vld [vmem:[#allocation4] sm:$0xff] }
 0x192   :  { %v643_v23 = vmul.f32 %v641_v20, %v641_v20  ;;  %v642_v24 = vsub.f32 %v623_v5, %v640_v21  ;;  %v876_v5 = vld [vmem:[#allocation4 + $0x78] sm:$0xff]  ;;  %v1226_v21 = vld [vmem:[%s1915_s6] ss:$0 sm:$0xff] }
 0x194   :  { %v645_v25 = vmul.f32 %v1798_v63, %v643_v23  ;;  %v644_v26 = vmul.f32 %v642_v24, %v642_v24 }
 0x196   :  { %v647_v27 = vrot.slane %v645_v25, 4  ;;  %v646_v28 = vmul.f32 %v1798_v63, %v644_v26 }
 0x198   :  { %v648_v29 = vadd.f32 %v647_v27, %v645_v25  ;;  %v653_v30 = vrot.slane %v646_v28, 4 }
 0x19a   :  { %v649_v31 = vrot.slane %v648_v29, 2  ;;  %v654_v32 = vadd.f32 %v653_v30, %v646_v28 }
 0x19c   :  { %v650_v33 = vadd.f32 %v649_v31, %v648_v29  ;;  %v655_v34 = vrot.slane %v654_v32, 2 }
 0x19e   :  { %v651_v35 = vrot.slane %v650_v33, 1  ;;  %v656_v36 = vadd.f32 %v655_v34, %v654_v32 }
 0x1a0   :  { %v652_v37 = vadd.f32 %v651_v35, %v650_v33  ;;  %v657_v38 = vrot.slane %v656_v36, 1 }
 0x1a2   :  { %v659_v39 = vmul.f32 0.5, %v652_v37  ;;  %v658_v40 = vadd.f32 %v657_v38, %v656_v36 }
 0x1a4   :  { %v662_v41 = vadd.f32 1e-05, %v659_v39  ;;  %v660_v42 = vmul.f32 0.5, %v658_v40 }
 0x1a6   :  { %v663_v43 = vadd.f32 1e-05, %v660_v42  ;;  %1435 = vrsqrt.f32 %v662_v41 }
 0x1a8   :  { %1437 = vrsqrt.f32 %v663_v43 }
 0x1b3   :  { %v1436_v50 = vpop.eup %1435 }
 0x1b5   :  { %v1438_v52 = vpop.eup %1437 }
 0x1b6   :  { %v668_v53 = vcombine.low %v1436_v50, %v1438_v52  ;;  %v1227_v52 = vld [vmem:[%s1917_s8] ss:$0 sm:$0xff] }
 0x1b8   :  { %v675_v54 = vrot.slane %v668_v53, %v674_v51 }
 0x1ba   :  { %v682_v56 = vrot.slane %v675_v54, %v674_v51 }
 0x1bc   :  { %v684_v58 = vmul.f32 %v682_v56, %v661_v55  ;;  %v1007_v56 = vld [vmem:[#allocation6 + $0x78] sm:$0xff] }
 0x1bd   :  { %1355 = vmatpush3.msra.mxu0 %v1007_v56  ;;  %v1124_v56 = vld [vmem:[#allocation7 + $0x8] sm:$0xff] }
 0x1be   :  { %v689_v59 = vrot.slane %v684_v58, %v1786_v47  ;;  %v693_v60 = vrot.slane %v684_v58, %v1792_v49  ;;  %v873_v49 = vld [vmem:[#allocation4 + $0x60] sm:$0xff]  ;;  %1356 = vmatprep.subr.mxu0 %v1539_v22  ;;  %v1005_v58 = vld [vmem:[#allocation6 + $0x68] sm:$0xff] }
 0x1bf   :  { %1357 = vmatpush3.msra.mxu0 %v1006_v57  ;;  %v1123_v57 = vld [vmem:[#allocation7] sm:$0xff] }
 0x1c0   :  { %v697_v62 = vmul.f32 %v693_v60, %v642_v24  ;;  %v696_v0 = vmul.f32 %v689_v59, %v641_v20  ;;  %1358 = vmatprep.subr.mxu0 %v1539_v22  ;;  %v1004_v59 = vld [vmem:[#allocation6 + $0x60] sm:$0xff]  ;;  %v1003_v60 = vld [vmem:[#allocation6 + $0x58] sm:$0xff] }
 0x1c1   :  { %1359 = vmatpush3.msra.mxu0 %v1005_v58  ;;  %v1230_v58 = vld [vmem:[%s1923_s14] ss:$0 sm:$0xff] }
 0x1c2   :  { %v711_v1 = vadd.f32 %v707_v46, %v697_v62  ;;  %v710_v2 = vadd.f32 %v703_v61, %v696_v0  ;;  %1360 = vmatprep.subr.mxu0 %v1539_v22  ;;  %v1002_v61 = vld [vmem:[#allocation6 + $0x50] sm:$0xff]  ;;  %v1001_v46 = vld [vmem:[#allocation6 + $0x48] sm:$0xff]  ;;  %v1000_v62 = vld [vmem:[#allocation6 + $0x40] sm:$0xff] }
 0x1c3   :  { %1361 = vmatpush3.msra.mxu0 %v1004_v59  ;;  %v999_v0 = vld [vmem:[#allocation6 + $0x38] sm:$0xff] }
 0x1c4   :  { %v713_v3 = vmax.f32 %v711_v1, 0.0  ;;  %v712_v4 = vmax.f32 %v710_v2, 0.0  ;;  %1362 = vmatprep.subr.mxu0 %v1539_v22  ;;  %v998_v1 = vld [vmem:[#allocation6 + $0x30] sm:$0xff]  ;;  %v997_v2 = vld [vmem:[#allocation6 + $0x28] sm:$0xff] }
 0x1c5   :  { %1363 = vmatpush3.msra.mxu0 %v1003_v60 }
 0x1c6   :  { %817 = vmatprep.mubr.f32.mxu1 %v713_v3  ;;  %1364 = vmatprep.subr.mxu0 %v1539_v22  ;;  %v996_v3 = vld [vmem:[#allocation6 + $0x20] sm:$0xff] }
 0x1c7   :  { %818 = vmatmul.mubr.f32.vlgmr.msra.gmra.mxu1 %v712_v4  ;;  %1365 = vmatpush3.msra.mxu0 %v1002_v61  ;;  %v995_v4 = vld [vmem:[#allocation6 + $0x18] sm:$0xff] }
 0x1c8   :  { %1320 = vmatpush3.msra.mxu1 %v876_v5  ;;  %1351 = vmatprep.mubr.msk.f32.mxu1 %vm1541_vm2, %v1539_v22  ;;  %v994_v5 = vld [vmem:[#allocation6 + $0x10] sm:$0xff] }
 0x1c9   :  { %1321 = vmatprep.subr.mxu1 %v1539_v22  ;;  %1366 = vmatprep.subr.mxu0 %v1539_v22 }
 0x1ca   :  { %1322 = vmatpush3.msra.mxu1 %v875_v6  ;;  %1367 = vmatpush3.msra.mxu0 %v1001_v46  ;;  %v993_v6 = vld [vmem:[#allocation6 + $0x8] sm:$0xff] }
 0x1cb   :  { %1323 = vmatprep.subr.mxu1 %v1539_v22  ;;  %1368 = vmatprep.subr.mxu0 %v1539_v22 }
 0x1cc   :  { %1324 = vmatpush3.msra.mxu1 %v874_v7  ;;  %1369 = vmatpush3.msra.mxu0 %v1000_v62  ;;  %v992_v7 = vld [vmem:[#allocation6] sm:$0xff] }
 0x1cd   :  { %1325 = vmatprep.subr.mxu1 %v1539_v22  ;;  %1370 = vmatprep.subr.mxu0 %v1539_v22 }
 0x1ce   :  { %1326 = vmatpush3.msra.mxu1 %v873_v49  ;;  %1371 = vmatpush3.msra.mxu0 %v999_v0  ;;  %v1228_v49 = vld [vmem:[%s1919_s10] ss:$0 sm:$0xff] }
 0x1cf   :  { %1327 = vmatprep.subr.mxu1 %v1539_v22  ;;  %1372 = vmatprep.subr.mxu0 %v1539_v22 }
 0x1d0   :  { %1328 = vmatpush3.msra.mxu1 %v872_v8  ;;  %1373 = vmatpush3.msra.mxu0 %v998_v1 }
 0x1d1   :  { %1329 = vmatprep.subr.mxu1 %v1539_v22  ;;  %1374 = vmatprep.subr.mxu0 %v1539_v22 }
 0x1d2   :  { %1330 = vmatpush3.msra.mxu1 %v871_v9  ;;  %1375 = vmatpush3.msra.mxu0 %v997_v2 }
 0x1d3   :  { %1331 = vmatprep.subr.mxu1 %v1539_v22  ;;  %1376 = vmatprep.subr.mxu0 %v1539_v22 }
 0x1d4   :  { %1332 = vmatpush3.msra.mxu1 %v870_v10  ;;  %1377 = vmatpush3.msra.mxu0 %v996_v3 }
 0x1d5   :  { %1333 = vmatprep.subr.mxu1 %v1539_v22  ;;  %1378 = vmatprep.subr.mxu0 %v1539_v22 }
 0x1d6   :  { %1334 = vmatpush3.msra.mxu1 %v869_v11  ;;  %1379 = vmatpush3.msra.mxu0 %v995_v4 }
 0x1d7   :  { %1335 = vmatprep.subr.mxu1 %v1539_v22  ;;  %1380 = vmatprep.subr.mxu0 %v1539_v22 }
 0x1d8   :  { %1336 = vmatpush3.msra.mxu1 %v868_v12  ;;  %1381 = vmatpush3.msra.mxu0 %v994_v5 }
 0x1d9   :  { %1337 = vmatprep.subr.mxu1 %v1539_v22  ;;  %1382 = vmatprep.subr.mxu0 %v1539_v22 }
 0x1da   :  { %1338 = vmatpush3.msra.mxu1 %v867_v13  ;;  %1383 = vmatpush3.msra.mxu0 %v993_v6 }
 0x1db   :  { %1339 = vmatprep.subr.mxu1 %v1539_v22  ;;  %1384 = vmatprep.subr.mxu0 %v1539_v22 }
 0x1dc   :  { %1340 = vmatpush3.msra.mxu1 %v866_v14  ;;  %1385 = vmatpush3.msra.mxu0 %v992_v7 }
 0x1dd   :  { %1341 = vmatprep.subr.mxu1 %v1539_v22 }
 0x1de   :  { %1342 = vmatpush3.msra.mxu1 %v865_v15 }
 0x1df   :  { %1343 = vmatprep.subr.mxu1 %v1539_v22 }
 0x1e0   :  { %1344 = vmatpush3.msra.mxu1 %v864_v16 }
 0x1e1   :  { %1345 = vmatprep.subr.mxu1 %v1539_v22 }
 0x1e2   :  { %1346 = vmatpush3.msra.mxu1 %v863_v17 }
 0x1e3   :  { %1347 = vmatprep.subr.mxu1 %v1539_v22 }
 0x1e4   :  { %1348 = vmatpush3.msra.mxu1 %v862_v18 }
 0x1e5   :  { %1349 = vmatprep.subr.mxu1 %v1539_v22 }
 0x1e6   :  { %1350 = vmatpush3.msra.mxu1 %v861_v19 }
 0x1e7   :  { %1389 = vmatprep.subr.mxu1 %v1539_v22 }
 0x287   :  { %v1265_v20 = vpop.f32.mrf.mxu1 }
 0x289   :  { %v1266_v23 = vpop.f32.mrf.mxu1 }
 0x28a   :  { %v1267_v24 = vadd.f32 %v1266_v23, %v1265_v20 }
 0x28c   :  { %v820_v25 = vadd.f32 %v1267_v24, %v1226_v21 }
 0x28e   :  { %v823_v26 = vmul.f32 %v1798_v63, %v820_v25 }
 0x290   :  { %v824_v27 = vrot.slane %v823_v26, 4 }
 0x292   :  { %v825_v28 = vadd.f32 %v824_v27, %v823_v26 }
 0x294   :  { %v826_v29 = vrot.slane %v825_v28, 2 }
 0x296   :  { %v827_v30 = vadd.f32 %v826_v29, %v825_v28 }
 0x298   :  { %v828_v31 = vrot.slane %v827_v30, 1 }
 0x29a   :  { %v829_v32 = vadd.f32 %v828_v31, %v827_v30  ;;  %v972_v31 = vld [vmem:[%s1920_s11] sm:$0x1] }
 0x29c   :  { %v830_v33 = vmul.f32 0.5, %v829_v32 }
 0x29e   :  { %v831_v34 = vsub.f32 %v820_v25, %v830_v33 }
 0x2a0   :  { %v832_v35 = vmul.f32 %v831_v34, %v831_v34 }
 0x2a2   :  { %v833_v36 = vmul.f32 %v1798_v63, %v832_v35  ;;  %v1229_v35 = vld [vmem:[%s1921_s12] ss:$0 sm:$0xff] }
 0x2a4   :  { %v834_v37 = vrot.slane %v833_v36, 4 }
 0x2a6   :  { %v835_v38 = vadd.f32 %v834_v37, %v833_v36 }
 0x2a8   :  { %v836_v39 = vrot.slane %v835_v38, 2 }
 0x2aa   :  { %v837_v40 = vadd.f32 %v836_v39, %v835_v38  ;;  %v1138_v39 = vld [vmem:[#allocation7 + $0x78] sm:$0xff] }
 0x2ac   :  { %v838_v41 = vrot.slane %v837_v40, 1 }
 0x2ae   :  { %v839_v42 = vadd.f32 %v838_v41, %v837_v40  ;;  %v1137_v40 = vld [vmem:[#allocation7 + $0x70] sm:$0xff]  ;;  %v1136_v41 = vld [vmem:[#allocation7 + $0x68] sm:$0xff] }
 0x2b0   :  { %v840_v43 = vmul.f32 0.5, %v839_v42  ;;  %v1135_v42 = vld [vmem:[#allocation7 + $0x60] sm:$0xff] }
 0x2b2   :  { %v842_v44 = vadd.f32 1e-05, %v840_v43  ;;  %v1134_v43 = vld [vmem:[#allocation7 + $0x58] sm:$0xff] }
 0x2b4   :  { %1439 = vrsqrt.f32 %v842_v44  ;;  %v1133_v44 = vld [vmem:[#allocation7 + $0x50] sm:$0xff] }
 0x2c1   :  { %v1440_v48 = vpop.eup %1439 }
 0x2c2   :  { %v844_v50 = vmul.f32 %v1440_v48, %v841_v45  ;;  %v1132_v45 = vld [vmem:[#allocation7 + $0x48] sm:$0xff]  ;;  %v1131_v48 = vld [vmem:[#allocation7 + $0x40] sm:$0xff] }
 0x2c4   :  { %v849_v51 = vrot.slane %v844_v50, %v1786_v47  ;;  %v1130_v50 = vld [vmem:[#allocation7 + $0x38] sm:$0xff] }
 0x2c6   :  { %v851_v53 = vmul.f32 %v849_v51, %v831_v34  ;;  %v1129_v51 = vld [vmem:[#allocation7 + $0x30] sm:$0xff] }
 0x2c8   :  { %v859_v54 = vadd.f32 %v1227_v52, %v851_v53  ;;  %v1128_v52 = vld [vmem:[#allocation7 + $0x28] sm:$0xff]  ;;  %v1127_v53 = vld [vmem:[#allocation7 + $0x20] sm:$0xff] }
 0x2ca   :  { %v860_v55 = vmax.f32 %v859_v54, 0.0  ;;  %v1126_v54 = vld [vmem:[#allocation7 + $0x18] sm:$0xff] }
 0x2cc   :  { %1352 = vmatmul.mubr.f32.vlgmr.msra.gmra.mxu1 %v860_v55  ;;  %v1125_v55 = vld [vmem:[#allocation7 + $0x10] sm:$0xff] }
 0x2cd   :  { %1421 = vmatprep.mubr.msk.f32.mxu1 %vm1541_vm2, %v1539_v22  ;;  %1390 = vmatpush3.msra.mxu1 %v1138_v39 }
 0x2ce   :  { %1391 = vmatprep.subr.mxu1 %v1539_v22 }
 0x2cf   :  { %1392 = vmatpush3.msra.mxu1 %v1137_v40 }
 0x2d0   :  { %1393 = vmatprep.subr.mxu1 %v1539_v22 }
 0x2d1   :  { %1394 = vmatpush3.msra.mxu1 %v1136_v41 }
 0x2d2   :  { %1395 = vmatprep.subr.mxu1 %v1539_v22 }
 0x2d3   :  { %1396 = vmatpush3.msra.mxu1 %v1135_v42 }
 0x2d4   :  { %1397 = vmatprep.subr.mxu1 %v1539_v22 }
 0x2d5   :  { %1398 = vmatpush3.msra.mxu1 %v1134_v43 }
 0x2d6   :  { %1399 = vmatprep.subr.mxu1 %v1539_v22 }
 0x2d7   :  { %1400 = vmatpush3.msra.mxu1 %v1133_v44 }
 0x2d8   :  { %1401 = vmatprep.subr.mxu1 %v1539_v22 }
 0x2d9   :  { %1402 = vmatpush3.msra.mxu1 %v1132_v45 }
 0x2da   :  { %1403 = vmatprep.subr.mxu1 %v1539_v22 }
 0x2db   :  { %1404 = vmatpush3.msra.mxu1 %v1131_v48 }
 0x2dc   :  { %1405 = vmatprep.subr.mxu1 %v1539_v22 }
 0x2dd   :  { %1406 = vmatpush3.msra.mxu1 %v1130_v50 }
 0x2de   :  { %1407 = vmatprep.subr.mxu1 %v1539_v22 }
 0x2df   :  { %1408 = vmatpush3.msra.mxu1 %v1129_v51 }
 0x2e0   :  { %1409 = vmatprep.subr.mxu1 %v1539_v22 }
 0x2e1   :  { %1410 = vmatpush3.msra.mxu1 %v1128_v52 }
 0x2e2   :  { %1411 = vmatprep.subr.mxu1 %v1539_v22 }
 0x2e3   :  { %1412 = vmatpush3.msra.mxu1 %v1127_v53 }
 0x2e4   :  { %1413 = vmatprep.subr.mxu1 %v1539_v22 }
 0x2e5   :  { %1414 = vmatpush3.msra.mxu1 %v1126_v54 }
 0x2e6   :  { %1415 = vmatprep.subr.mxu1 %v1539_v22 }
 0x2e7   :  { %1416 = vmatpush3.msra.mxu1 %v1125_v55 }
 0x2e8   :  { %1417 = vmatprep.subr.mxu1 %v1539_v22 }
 0x2e9   :  { %1418 = vmatpush3.msra.mxu1 %v1124_v56 }
 0x2ea   :  { %1419 = vmatprep.subr.mxu1 %v1539_v22 }
 0x2eb   :  { %1420 = vmatpush3.msra.mxu1 %v1123_v57 }
 0x38c   :  { %v950_v8 = vpop.f32.mrf.mxu1 }
 0x38d   :  { %v951_v9 = vadd.f32 %v1228_v49, %v950_v8 }
 0x38e   :  { %v1353_v10 = vpop.f32.mrf.mxu1 }
 0x38f   :  { %v954_v11 = vmul.f32 %v1798_v63, %v951_v9 }
 0x391   :  { %v955_v12 = vrot.slane %v954_v11, 4 }
 0x393   :  { %v956_v13 = vadd.f32 %v955_v12, %v954_v11 }
 0x395   :  { %v957_v14 = vrot.slane %v956_v13, 2 }
 0x397   :  { %v958_v15 = vadd.f32 %v957_v14, %v956_v13 }
 0x399   :  { %v959_v16 = vrot.slane %v958_v15, 1 }
 0x39b   :  { %v960_v17 = vadd.f32 %v959_v16, %v958_v15  ;;  %v1103_v15 = vld [vmem:[%s1924_s15] sm:$0x1] }
 0x39d   :  { %v961_v18 = vmul.f32 0.5, %v960_v17 }
 0x39f   :  { %v962_v19 = vsub.f32 %v951_v9, %v961_v18 }
 0x3a1   :  { %v963_v20 = vmul.f32 %v962_v19, %v962_v19 }
 0x3a3   :  { %v964_v21 = vmul.f32 %v1798_v63, %v963_v20 }
 0x3a5   :  { %v965_v23 = vrot.slane %v964_v21, 4 }
 0x3a7   :  { %v966_v24 = vadd.f32 %v965_v23, %v964_v21  ;;  %v1232_v23 = vld [vmem:[%s1927_s18] ss:$0 sm:$0xff] }
 0x3a9   :  { %v967_v25 = vrot.slane %v966_v24, 2 }
 0x3ab   :  { %v968_v26 = vadd.f32 %v967_v25, %v966_v24 }
 0x3ad   :  { %v969_v27 = vrot.slane %v968_v26, 1 }
 0x3af   :  { %v970_v28 = vadd.f32 %v969_v27, %v968_v26 }
 0x3b1   :  { %v971_v29 = vmul.f32 0.5, %v970_v28 }
 0x3b3   :  { %v973_v30 = vadd.f32 1e-05, %v971_v29 }
 0x3b5   :  { %1441 = vrsqrt.f32 %v973_v30 }
 0x3c2   :  { %v1442_v32 = vpop.eup %1441 }
 0x3c3   :  { %v975_v33 = vmul.f32 %v1442_v32, %v972_v31 }
 0x3c5   :  { %v980_v34 = vrot.slane %v975_v33, %v1786_v47 }
 0x3c7   :  { %v982_v36 = vmul.f32 %v980_v34, %v962_v19 }
 0x3c9   :  { %v990_v37 = vadd.f32 %v1229_v35, %v982_v36 }
 0x3cb   :  { %v991_v38 = vmax.f32 %v990_v37, 0.0 }
 0x3cd   :  { %1387 = vmatmul.mubr.f32.vlgmr.msra.gmra.mxu0 %v991_v38 }
 0x48d   :  { %v1081_v59 = vpop.f32.mrf.mxu0 }
 0x48e   :  { %v1082_v60 = vadd.f32 %v1230_v58, %v1081_v59 }
 0x48f   :  { %v1388_v61 = vpop.f32.mrf.mxu0 }
 0x490   :  { %v1085_v46 = vmul.f32 %v1798_v63, %v1082_v60 }
 0x492   :  { %v1086_v62 = vrot.slane %v1085_v46, 4 }
 0x494   :  { %v1087_v0 = vadd.f32 %v1086_v62, %v1085_v46 }
 0x496   :  { %v1088_v1 = vrot.slane %v1087_v0, 2 }
 0x498   :  { %v1089_v2 = vadd.f32 %v1088_v1, %v1087_v0 }
 0x49a   :  { %v1090_v3 = vrot.slane %v1089_v2, 1 }
 0x49c   :  { %v1091_v4 = vadd.f32 %v1090_v3, %v1089_v2 }
 0x49e   :  { %v1092_v5 = vmul.f32 0.5, %v1091_v4 }
 0x4a0   :  { %v1093_v6 = vsub.f32 %v1082_v60, %v1092_v5 }
 0x4a2   :  { %v1094_v22 = vmul.f32 %v1093_v6, %v1093_v6 }
 0x4a4   :  { %v1095_v7 = vmul.f32 %v1798_v63, %v1094_v22  ;;  %v1231_v63 = vld [vmem:[%s1925_s16] ss:$0 sm:$0xff] }
 0x4a6   :  { %v1096_v49 = vrot.slane %v1095_v7, 4 }
 0x4a8   :  { %v1097_v8 = vadd.f32 %v1096_v49, %v1095_v7 }
 0x4aa   :  { %v1098_v9 = vrot.slane %v1097_v8, 2 }
 0x4ac   :  { %v1099_v10 = vadd.f32 %v1098_v9, %v1097_v8 }
 0x4ae   :  { %v1100_v11 = vrot.slane %v1099_v10, 1 }
 0x4b0   :  { %v1101_v12 = vadd.f32 %v1100_v11, %v1099_v10 }
 0x4b2   :  { %v1102_v13 = vmul.f32 0.5, %v1101_v12 }
 0x4b4   :  { %v1104_v14 = vadd.f32 1e-05, %v1102_v13 }
 0x4b6   :  { %1443 = vrsqrt.f32 %v1104_v14 }
 0x4c3   :  { %v1444_v16 = vpop.eup %1443 }
 0x4c4   :  { %v1106_v17 = vmul.f32 %v1444_v16, %v1103_v15 }
 0x4c6   :  { %v1111_v18 = vrot.slane %v1106_v17, %v1786_v47 }
 0x4c8   :  { %v1113_v19 = vmul.f32 %v1111_v18, %v1093_v6 }
 0x4ca   :  { %v1121_v20 = vadd.f32 %v1231_v63, %v1113_v19 }
 0x4cc   :  { %v1122_v21 = vmax.f32 %v1121_v20, 0.0 }
 0x4ce   :  { %1422 = vmatmul.mubr.f32.vlgmr.msra.gmra.mxu1 %v1122_v21 }
 0x58e   :  { %v1212_v24 = vpop.f32.mrf.mxu1 }
 0x58f   :  { %v1213_v25 = vadd.f32 %v1232_v23, %v1212_v24 }
 0x590   :  { %v1423_v26 = vpop.f32.mrf.mxu1 }
 0x591   :  { %1216 = vst [vmem:[%s1928_s19] sm:$0xff] %v1213_v25 }
 0x592   :  { %1221 = vsyncpa [#allocation3], 1 }
 0x593   :  { %1222 = vsyncpa [#allocation5], 1 }
 0x594   :  { %1223 = vsyncpa [#allocation8], 1 }

</bundles_post_ra>
